<compile_context>
chip_gen: v5e
topology: v5e:2x2
jax: 0.10.0
libtpu: 0.0.40
codegen_flags: <defaults>
</compile_context>

<pallas_src>
import functools

import jax
import jax.numpy as jnp
from jax import lax
from jax.experimental import pallas as pl
from jax.experimental.pallas import tpu as pltpu
import numpy as np


# ----------------------------------------------------------------------------
# Pallas kernel
# ----------------------------------------------------------------------------

def sepconv_mv1_kernel(*refs, B, Cin, La, F, Bk, offsets, mask_rows, mm_dtype):
    """Fused depthwise KxK (BN folded) -> ReLU -> pointwise 1x1, channel-major.

    refs = (x, dw, dwb, pwt, pwb[, masks], out)
      x     : (B, Cin, H*W)   flat NCHW input (H*W on the lane dim)
      dw    : (K*K, Cin, 1)   depthwise taps, BN scale folded in
      dwb   : (1, Cin, 1)     folded BN shift (+ folded depthwise bias)
      pwt   : (Cout, Cin)     pointwise weights (torch layout)
      pwb   : (Cout, 1)       pointwise bias (zeros if bias=False)
      masks : (n_masks, La)   0/1 boundary masks for border-crossing taps only
      out   : (B, Cout, La)   channel-major output, row stride = input row stride W
    """
    if any(m >= 0 for m in mask_rows):
        x_ref, dw_ref, dwb_ref, pwt_ref, pwb_ref, masks_ref, o_ref = refs
        masks = masks_ref[...]
    else:
        x_ref, dw_ref, dwb_ref, pwt_ref, pwb_ref, o_ref = refs
        masks = None

    # ---- zero-extended flat input (only the 1-D front/back halo; no 2-D pad scratch) ----
    x = x_ref[...]
    if F > 0 or Bk > 0:
        parts = []
        if F > 0:
            parts.append(jnp.zeros((B, Cin, F), x.dtype))
        parts.append(x)
        if Bk > 0:
            parts.append(jnp.zeros((B, Cin, Bk), x.dtype))
        xext = jnp.concatenate(parts, axis=-1)
    else:
        xext = x

    dw = dw_ref[...]      # (K*K, Cin, 1)
    dwb = dwb_ref[...]    # (1, Cin, 1)

    # ---- depthwise KxK: lane-shifted slices, per-channel weight, boundary masks ----
    acc = None
    for t, off in enumerate(offsets):
        tap = xext[:, :, off:off + La]          # (B, Cin, La), static lane-offset slice
        term = tap * dw[t]                      # per-channel scale (sublane broadcast)
        if mask_rows[t] >= 0:
            term = term * masks[mask_rows[t]]   # zero out-of-image contributions
        # Fold the BN shift into the first tap instead of a separate bias pass.
        acc = (term + dwb) if acc is None else (acc + term)

    acc = jnp.maximum(acc, 0.0)                 # ReLU

    # ---- pointwise 1x1: ONE MXU matmul over all B*La columns ----
    rhs = jnp.concatenate([acc[b] for b in range(B)], axis=-1) if B > 1 else acc[0]
    y = lax.dot_general(pwt_ref[...].astype(mm_dtype), rhs.astype(mm_dtype),
                        (((1,), (0,)), ((), ())),
                        preferred_element_type=jnp.float32)     # (Cout, B*La)
    y = y + pwb_ref[...]                                        # (Cout, 1) broadcast
    for b in range(B):                                          # 128-aligned slices (La = 2*128)
        o_ref[b] = y[:, b * La:(b + 1) * La].astype(o_ref.dtype)


# ----------------------------------------------------------------------------
# Wrapper: BN folding, tap geometry (trace time / numpy), pallas_call
# ----------------------------------------------------------------------------

def _fold_params(params, eps=1e-5):
    """Fold eval-mode BN into the depthwise conv; reshape torch-layout weights."""
    conv1_w = params['conv1_w']                       # (Cin, 1, K, K)
    pw_w = params['pointwise_w']                      # (Cout, Cin, 1, 1)
    Cin, _, K, _ = conv1_w.shape
    Cout = pw_w.shape[0]

    scale = params['bn_gamma'] / jnp.sqrt(params['bn_var'] + eps)   # (Cin,)
    shift = params['bn_beta'] - params['bn_mean'] * scale           # (Cin,)

    dw = jnp.transpose(conv1_w.reshape(Cin, K * K), (1, 0))         # (K*K, Cin)
    dw = (dw * scale[None, :]).reshape(K * K, Cin, 1)
    dwb = shift
    if params.get('conv1_b') is not None:
        dwb = dwb + params['conv1_b'] * scale
    dwb = dwb.reshape(1, Cin, 1)

    pwt = pw_w.reshape(Cout, Cin)
    pwb = params.get('pointwise_b')
    pwb = (jnp.zeros((Cout,), jnp.float32) if pwb is None else pwb).reshape(Cout, 1)
    return (dw.astype(jnp.float32), dwb.astype(jnp.float32),
            pwt.astype(jnp.float32), pwb.astype(jnp.float32))


def _tap_geometry(H, W, K, pad, dil):
    """Static (numpy) tap offsets + boundary masks for the shifted-slice depthwise conv."""
    Ho = H + 2 * pad - dil * (K - 1)
    Wo = W + 2 * pad - dil * (K - 1)
    assert Ho > 0 and Wo > 0
    # Output rows reuse the input row stride W -> requires no over-padding.
    assert 2 * pad <= dil * (K - 1), \
        "over-padded config (2*pad > dilation*(K-1)) not supported"   # TODO(synk)

    La = (Ho - 1) * W + Wo          # flat accumulator length (row stride W)
    F = pad * (W + 1)               # front zero-extension of the flat input

    p = np.arange(La)
    ho, wo = p // W, p % W
    offsets, mask_rows, masks = [], [], []
    for kh in range(K):
        for kw in range(K):
            d = (kh * dil - pad) * W + (kw * dil - pad)
            offsets.append(F + d)                 # >= 0 by construction
            r = ho + kh * dil - pad
            c = wo + kw * dil - pad
            valid = (r >= 0) & (r < H) & (c >= 0) & (c < W)
            valid = valid | (wo >= Wo)            # junk columns: value is discarded
            if valid.all():
                mask_rows.append(-1)              # interior tap: no mask multiply
            else:
                mask_rows.append(len(masks))
                masks.append(valid.astype(np.float32))
    Bk = max(0, (max(offsets) - F) + La - H * W)  # back zero-extension
    return Ho, Wo, La, F, Bk, tuple(offsets), tuple(mask_rows), masks


def separable_conv2d_mv1(x_nchw, params, *, kernel_size=1, stride=1, padding=0,
                         dilation=1, eps=1e-5, use_bf16_matmul=False):
    assert stride == 1, "stride > 1 not implemented"   # TODO(synk)
    B, Cin, H, W = x_nchw.shape
    K, pad, dil = kernel_size, padding, dilation
    dw, dwb, pwt, pwb = _fold_params(params, eps=eps)
    Cout = pwt.shape[0]

    Ho, Wo, La, F, Bk, offsets, mask_rows, masks = _tap_geometry(H, W, K, pad, dil)

    # Free reshape of NCHW -> (B, Cin, H*W): no HBM transpose, channel-major in kernel.
    x_flat = x_nchw.reshape(B, Cin, H * W).astype(jnp.float32)

    inputs = [x_flat, dw, dwb, pwt, pwb]
    if masks:
        inputs.append(jnp.asarray(np.stack(masks, axis=0)))     # (n_masks, La), tiny

    kern = functools.partial(
        sepconv_mv1_kernel, B=B, Cin=Cin, La=La, F=F, Bk=Bk,
        offsets=offsets, mask_rows=mask_rows,
        mm_dtype=jnp.bfloat16 if use_bf16_matmul else jnp.float32)

    y = pl.pallas_call(
        kern,
        out_shape=jax.ShapeDtypeStruct((B, Cout, La), jnp.float32),
        in_specs=[pl.BlockSpec(memory_space=pltpu.MemorySpace.VMEM)] * len(inputs),
        out_specs=pl.BlockSpec(memory_space=pltpu.MemorySpace.VMEM),
    )(*inputs)

    # Channel-major (B, Cout, La) -> NCHW.  For "same" convs (Wo == W) this is a
    # pure reshape; otherwise drop the junk columns between rows.
    if Wo == W:
        return y.reshape(B, Cout, Ho, Wo)
    y = jnp.pad(y, ((0, 0), (0, 0), (0, Ho * W - La)))
    return y.reshape(B, Cout, Ho, W)[:, :, :, :Wo]


# ----------------------------------------------------------------------------
# Pure-JAX (XLA conv) reference
# ----------------------------------------------------------------------------

def ref_forward(x_nchw, params, *, kernel_size=1, padding=0, dilation=1, eps=1e-5):
    conv1_w = params['conv1_w']
    pw_w = params['pointwise_w']
    Cin = conv1_w.shape[0]
    y = lax.conv_general_dilated(
        x_nchw, conv1_w, window_strides=(1, 1),
        padding=[(padding, padding), (padding, padding)],
        rhs_dilation=(dilation, dilation),
        dimension_numbers=('NCHW', 'OIHW', 'NCHW'),
        feature_group_count=Cin)
    if params.get('conv1_b') is not None:
        y = y + params['conv1_b'].reshape(1, Cin, 1, 1)
    scale = params['bn_gamma'] / jnp.sqrt(params['bn_var'] + eps)
    shift = params['bn_beta'] - params['bn_mean'] * scale
    y = y * scale.reshape(1, Cin, 1, 1) + shift.reshape(1, Cin, 1, 1)
    y = jnp.maximum(y, 0.0)
    y = lax.conv_general_dilated(
        y, pw_w, (1, 1), [(0, 0), (0, 0)],
        dimension_numbers=('NCHW', 'OIHW', 'NCHW'))
    if params.get('pointwise_b') is not None:
        y = y + params['pointwise_b'].reshape(1, -1, 1, 1)
    return y


# ----------------------------------------------------------------------------
# Deterministic params + main
# ----------------------------------------------------------------------------

def init_params(key, in_channels, out_channels, kernel_size, bias=False):
    ks = jax.random.split(key, 8)
    Cin, Cout, K = in_channels, out_channels, kernel_size
    p = dict(
        conv1_w=0.3 * jax.random.normal(ks[0], (Cin, 1, K, K), jnp.float32),
        pointwise_w=0.2 * jax.random.normal(ks[1], (Cout, Cin, 1, 1), jnp.float32),
        bn_gamma=1.0 + 0.1 * jax.random.normal(ks[2], (Cin,), jnp.float32),
        bn_beta=0.1 * jax.random.normal(ks[3], (Cin,), jnp.float32),
        bn_mean=0.1 * jax.random.normal(ks[4], (Cin,), jnp.float32),
        bn_var=(1.0 + 0.1 * jax.random.normal(ks[5], (Cin,), jnp.float32)) ** 2,
        conv1_b=None,
        pointwise_b=None,
    )
    if bias:
        p['conv1_b'] = 0.1 * jax.random.normal(ks[6], (Cin,), jnp.float32)
        p['pointwise_b'] = 0.1 * jax.random.normal(ks[7], (Cout,), jnp.float32)
    return p


if __name__ == "__main__":
    key = jax.random.PRNGKey(0)
    kx, kp1, kp2 = jax.random.split(key, 3)

    B, Cin, Cout, H, W = 2, 32, 16, 16, 16
    x = jax.random.normal(kx, (B, Cin, H, W), jnp.float32)   # NCHW, like torch

    # Config A: 3x3 depthwise with padding=1 ("same"), no conv biases.
    pA = init_params(kp1, Cin, Cout, kernel_size=3, bias=False)
    outA = jax.block_until_ready(separable_conv2d_mv1(x, pA, kernel_size=3, padding=1))
    refA = ref_forward(x, pA, kernel_size=3, padding=1)
    np.testing.assert_allclose(np.asarray(outA), np.asarray(refA), rtol=5e-3, atol=1e-3)

    # Config B: module defaults (kernel_size=1, padding=0), with conv biases enabled.
    pB = init_params(kp2, Cin, Cout, kernel_size=1, bias=True)
    outB = jax.block_until_ready(separable_conv2d_mv1(x, pB, kernel_size=1, padding=0))
    refB = ref_forward(x, pB, kernel_size=1, padding=0)
    np.testing.assert_allclose(np.asarray(outB), np.asarray(refB), rtol=5e-3, atol=1e-3)

    # Config C: bf16 MXU operands (v6e/v7x fast path), f32 accumulation, looser tolerance.
    outC = jax.block_until_ready(
        separable_conv2d_mv1(x, pA, kernel_size=3, padding=1, use_bf16_matmul=True))
    np.testing.assert_allclose(np.asarray(outC), np.asarray(refA), rtol=2e-2, atol=2e-2)

    print("KERNEL_OK")
</pallas_src>

<mosaic_0001>
module attributes {stable_mosaic.version = 11 : i64} {
  func.func @sepconv_mv1_kernel(%arg0: memref<2x32x256xf32, #tpu.memory_space<vmem>>, %arg1: memref<9x32x1xf32, #tpu.memory_space<vmem>>, %arg2: memref<1x32x1xf32, #tpu.memory_space<vmem>>, %arg3: memref<16x32xf32, #tpu.memory_space<vmem>>, %arg4: memref<16x1xf32, #tpu.memory_space<vmem>>, %arg5: memref<8x256xf32, #tpu.memory_space<vmem>>, %arg6: memref<2x16x256xf32, #tpu.memory_space<vmem>>) attributes {dimension_semantics = [], scalar_prefetch = 0 : i64, scratch_operands = 0 : i64, tpu.core_type = #tpu.core_type<tc>} {
    %c0 = arith.constant 0 : index
    %c0_0 = arith.constant 0 : index
    %0 = vector.load %arg5[%c0, %c0_0] : memref<8x256xf32, #tpu.memory_space<vmem>>, vector<8x256xf32>
    %c0_1 = arith.constant 0 : index
    %c0_2 = arith.constant 0 : index
    %c0_3 = arith.constant 0 : index
    %1 = vector.load %arg0[%c0_1, %c0_2, %c0_3] : memref<2x32x256xf32, #tpu.memory_space<vmem>>, vector<2x32x256xf32>
    %cst = arith.constant 0.000000e+00 : f32
    %2 = vector.broadcast %cst : f32 to vector<2x32x17xf32>
    %cst_4 = arith.constant 0.000000e+00 : f32
    %3 = vector.broadcast %cst_4 : f32 to vector<2x32x17xf32>
    %4 = tpu.concatenate %2, %1, %3 in 2 : vector<2x32x17xf32>, vector<2x32x256xf32>, vector<2x32x17xf32> -> vector<2x32x290xf32>
    %c0_5 = arith.constant 0 : index
    %c0_6 = arith.constant 0 : index
    %c0_7 = arith.constant 0 : index
    %5 = vector.load %arg1[%c0_5, %c0_6, %c0_7] : memref<9x32x1xf32, #tpu.memory_space<vmem>>, vector<9x32x1xf32>
    %c0_8 = arith.constant 0 : index
    %c0_9 = arith.constant 0 : index
    %c0_10 = arith.constant 0 : index
    %6 = vector.load %arg2[%c0_8, %c0_9, %c0_10] : memref<1x32x1xf32, #tpu.memory_space<vmem>>, vector<1x32x1xf32>
    %7 = vector.extract_strided_slice %4 {offsets = [0, 0, 0], sizes = [2, 32, 256], strides = [1, 1, 1]} : vector<2x32x290xf32> to vector<2x32x256xf32>
    %8 = vector.extract_strided_slice %5 {offsets = [0, 0, 0], sizes = [1, 32, 1], strides = [1, 1, 1]} : vector<9x32x1xf32> to vector<1x32x1xf32>
    %9 = vector.shape_cast %8 : vector<1x32x1xf32> to vector<32x1xf32>
    %10 = vector.shape_cast %9 : vector<32x1xf32> to vector<1x32x1xf32>
    %11 = vector.broadcast %10 : vector<1x32x1xf32> to vector<2x32x256xf32>
    %12 = arith.mulf %7, %11 : vector<2x32x256xf32>
    %13 = vector.extract_strided_slice %0 {offsets = [0, 0], sizes = [1, 256], strides = [1, 1]} : vector<8x256xf32> to vector<1x256xf32>
    %14 = vector.shape_cast %13 : vector<1x256xf32> to vector<256xf32>
    %15 = vector.shape_cast %14 : vector<256xf32> to vector<1x1x256xf32>
    %16 = vector.broadcast %15 : vector<1x1x256xf32> to vector<2x32x256xf32>
    %17 = arith.mulf %12, %16 : vector<2x32x256xf32>
    %18 = vector.broadcast %6 : vector<1x32x1xf32> to vector<2x32x256xf32>
    %19 = arith.addf %17, %18 : vector<2x32x256xf32>
    %20 = vector.extract_strided_slice %4 {offsets = [0, 0, 1], sizes = [2, 32, 256], strides = [1, 1, 1]} : vector<2x32x290xf32> to vector<2x32x256xf32>
    %21 = vector.extract_strided_slice %5 {offsets = [1, 0, 0], sizes = [1, 32, 1], strides = [1, 1, 1]} : vector<9x32x1xf32> to vector<1x32x1xf32>
    %22 = vector.shape_cast %21 : vector<1x32x1xf32> to vector<32x1xf32>
    %23 = vector.shape_cast %22 : vector<32x1xf32> to vector<1x32x1xf32>
    %24 = vector.broadcast %23 : vector<1x32x1xf32> to vector<2x32x256xf32>
    %25 = arith.mulf %20, %24 : vector<2x32x256xf32>
    %26 = vector.extract_strided_slice %0 {offsets = [1, 0], sizes = [1, 256], strides = [1, 1]} : vector<8x256xf32> to vector<1x256xf32>
    %27 = vector.shape_cast %26 : vector<1x256xf32> to vector<256xf32>
    %28 = vector.shape_cast %27 : vector<256xf32> to vector<1x1x256xf32>
    %29 = vector.broadcast %28 : vector<1x1x256xf32> to vector<2x32x256xf32>
    %30 = arith.mulf %25, %29 : vector<2x32x256xf32>
    %31 = arith.addf %19, %30 : vector<2x32x256xf32>
    %32 = vector.extract_strided_slice %4 {offsets = [0, 0, 2], sizes = [2, 32, 256], strides = [1, 1, 1]} : vector<2x32x290xf32> to vector<2x32x256xf32>
    %33 = vector.extract_strided_slice %5 {offsets = [2, 0, 0], sizes = [1, 32, 1], strides = [1, 1, 1]} : vector<9x32x1xf32> to vector<1x32x1xf32>
    %34 = vector.shape_cast %33 : vector<1x32x1xf32> to vector<32x1xf32>
    %35 = vector.shape_cast %34 : vector<32x1xf32> to vector<1x32x1xf32>
    %36 = vector.broadcast %35 : vector<1x32x1xf32> to vector<2x32x256xf32>
    %37 = arith.mulf %32, %36 : vector<2x32x256xf32>
    %38 = vector.extract_strided_slice %0 {offsets = [2, 0], sizes = [1, 256], strides = [1, 1]} : vector<8x256xf32> to vector<1x256xf32>
    %39 = vector.shape_cast %38 : vector<1x256xf32> to vector<256xf32>
    %40 = vector.shape_cast %39 : vector<256xf32> to vector<1x1x256xf32>
    %41 = vector.broadcast %40 : vector<1x1x256xf32> to vector<2x32x256xf32>
    %42 = arith.mulf %37, %41 : vector<2x32x256xf32>
    %43 = arith.addf %31, %42 : vector<2x32x256xf32>
    %44 = vector.extract_strided_slice %4 {offsets = [0, 0, 16], sizes = [2, 32, 256], strides = [1, 1, 1]} : vector<2x32x290xf32> to vector<2x32x256xf32>
    %45 = vector.extract_strided_slice %5 {offsets = [3, 0, 0], sizes = [1, 32, 1], strides = [1, 1, 1]} : vector<9x32x1xf32> to vector<1x32x1xf32>
    %46 = vector.shape_cast %45 : vector<1x32x1xf32> to vector<32x1xf32>
    %47 = vector.shape_cast %46 : vector<32x1xf32> to vector<1x32x1xf32>
    %48 = vector.broadcast %47 : vector<1x32x1xf32> to vector<2x32x256xf32>
    %49 = arith.mulf %44, %48 : vector<2x32x256xf32>
    %50 = vector.extract_strided_slice %0 {offsets = [3, 0], sizes = [1, 256], strides = [1, 1]} : vector<8x256xf32> to vector<1x256xf32>
    %51 = vector.shape_cast %50 : vector<1x256xf32> to vector<256xf32>
    %52 = vector.shape_cast %51 : vector<256xf32> to vector<1x1x256xf32>
    %53 = vector.broadcast %52 : vector<1x1x256xf32> to vector<2x32x256xf32>
    %54 = arith.mulf %49, %53 : vector<2x32x256xf32>
    %55 = arith.addf %43, %54 : vector<2x32x256xf32>
    %56 = vector.extract_strided_slice %4 {offsets = [0, 0, 17], sizes = [2, 32, 256], strides = [1, 1, 1]} : vector<2x32x290xf32> to vector<2x32x256xf32>
    %57 = vector.extract_strided_slice %5 {offsets = [4, 0, 0], sizes = [1, 32, 1], strides = [1, 1, 1]} : vector<9x32x1xf32> to vector<1x32x1xf32>
    %58 = vector.shape_cast %57 : vector<1x32x1xf32> to vector<32x1xf32>
    %59 = vector.shape_cast %58 : vector<32x1xf32> to vector<1x32x1xf32>
    %60 = vector.broadcast %59 : vector<1x32x1xf32> to vector<2x32x256xf32>
    %61 = arith.mulf %56, %60 : vector<2x32x256xf32>
    %62 = arith.addf %55, %61 : vector<2x32x256xf32>
    %63 = vector.extract_strided_slice %4 {offsets = [0, 0, 18], sizes = [2, 32, 256], strides = [1, 1, 1]} : vector<2x32x290xf32> to vector<2x32x256xf32>
    %64 = vector.extract_strided_slice %5 {offsets = [5, 0, 0], sizes = [1, 32, 1], strides = [1, 1, 1]} : vector<9x32x1xf32> to vector<1x32x1xf32>
    %65 = vector.shape_cast %64 : vector<1x32x1xf32> to vector<32x1xf32>
    %66 = vector.shape_cast %65 : vector<32x1xf32> to vector<1x32x1xf32>
    %67 = vector.broadcast %66 : vector<1x32x1xf32> to vector<2x32x256xf32>
    %68 = arith.mulf %63, %67 : vector<2x32x256xf32>
    %69 = vector.extract_strided_slice %0 {offsets = [4, 0], sizes = [1, 256], strides = [1, 1]} : vector<8x256xf32> to vector<1x256xf32>
    %70 = vector.shape_cast %69 : vector<1x256xf32> to vector<256xf32>
    %71 = vector.shape_cast %70 : vector<256xf32> to vector<1x1x256xf32>
    %72 = vector.broadcast %71 : vector<1x1x256xf32> to vector<2x32x256xf32>
    %73 = arith.mulf %68, %72 : vector<2x32x256xf32>
    %74 = arith.addf %62, %73 : vector<2x32x256xf32>
    %75 = vector.extract_strided_slice %4 {offsets = [0, 0, 32], sizes = [2, 32, 256], strides = [1, 1, 1]} : vector<2x32x290xf32> to vector<2x32x256xf32>
    %76 = vector.extract_strided_slice %5 {offsets = [6, 0, 0], sizes = [1, 32, 1], strides = [1, 1, 1]} : vector<9x32x1xf32> to vector<1x32x1xf32>
    %77 = vector.shape_cast %76 : vector<1x32x1xf32> to vector<32x1xf32>
    %78 = vector.shape_cast %77 : vector<32x1xf32> to vector<1x32x1xf32>
    %79 = vector.broadcast %78 : vector<1x32x1xf32> to vector<2x32x256xf32>
    %80 = arith.mulf %75, %79 : vector<2x32x256xf32>
    %81 = vector.extract_strided_slice %0 {offsets = [5, 0], sizes = [1, 256], strides = [1, 1]} : vector<8x256xf32> to vector<1x256xf32>
    %82 = vector.shape_cast %81 : vector<1x256xf32> to vector<256xf32>
    %83 = vector.shape_cast %82 : vector<256xf32> to vector<1x1x256xf32>
    %84 = vector.broadcast %83 : vector<1x1x256xf32> to vector<2x32x256xf32>
    %85 = arith.mulf %80, %84 : vector<2x32x256xf32>
    %86 = arith.addf %74, %85 : vector<2x32x256xf32>
    %87 = vector.extract_strided_slice %4 {offsets = [0, 0, 33], sizes = [2, 32, 256], strides = [1, 1, 1]} : vector<2x32x290xf32> to vector<2x32x256xf32>
    %88 = vector.extract_strided_slice %5 {offsets = [7, 0, 0], sizes = [1, 32, 1], strides = [1, 1, 1]} : vector<9x32x1xf32> to vector<1x32x1xf32>
    %89 = vector.shape_cast %88 : vector<1x32x1xf32> to vector<32x1xf32>
    %90 = vector.shape_cast %89 : vector<32x1xf32> to vector<1x32x1xf32>
    %91 = vector.broadcast %90 : vector<1x32x1xf32> to vector<2x32x256xf32>
    %92 = arith.mulf %87, %91 : vector<2x32x256xf32>
    %93 = vector.extract_strided_slice %0 {offsets = [6, 0], sizes = [1, 256], strides = [1, 1]} : vector<8x256xf32> to vector<1x256xf32>
    %94 = vector.shape_cast %93 : vector<1x256xf32> to vector<256xf32>
    %95 = vector.shape_cast %94 : vector<256xf32> to vector<1x1x256xf32>
    %96 = vector.broadcast %95 : vector<1x1x256xf32> to vector<2x32x256xf32>
    %97 = arith.mulf %92, %96 : vector<2x32x256xf32>
    %98 = arith.addf %86, %97 : vector<2x32x256xf32>
    %99 = vector.extract_strided_slice %4 {offsets = [0, 0, 34], sizes = [2, 32, 256], strides = [1, 1, 1]} : vector<2x32x290xf32> to vector<2x32x256xf32>
    %100 = vector.extract_strided_slice %5 {offsets = [8, 0, 0], sizes = [1, 32, 1], strides = [1, 1, 1]} : vector<9x32x1xf32> to vector<1x32x1xf32>
    %101 = vector.shape_cast %100 : vector<1x32x1xf32> to vector<32x1xf32>
    %102 = vector.shape_cast %101 : vector<32x1xf32> to vector<1x32x1xf32>
    %103 = vector.broadcast %102 : vector<1x32x1xf32> to vector<2x32x256xf32>
    %104 = arith.mulf %99, %103 : vector<2x32x256xf32>
    %105 = vector.extract_strided_slice %0 {offsets = [7, 0], sizes = [1, 256], strides = [1, 1]} : vector<8x256xf32> to vector<1x256xf32>
    %106 = vector.shape_cast %105 : vector<1x256xf32> to vector<256xf32>
    %107 = vector.shape_cast %106 : vector<256xf32> to vector<1x1x256xf32>
    %108 = vector.broadcast %107 : vector<1x1x256xf32> to vector<2x32x256xf32>
    %109 = arith.mulf %104, %108 : vector<2x32x256xf32>
    %110 = arith.addf %98, %109 : vector<2x32x256xf32>
    %cst_11 = arith.constant 0.000000e+00 : f32
    %111 = vector.broadcast %cst_11 : f32 to vector<2x32x256xf32>
    %112 = arith.maximumf %110, %111 : vector<2x32x256xf32>
    %113 = vector.extract_strided_slice %112 {offsets = [0, 0, 0], sizes = [1, 32, 256], strides = [1, 1, 1]} : vector<2x32x256xf32> to vector<1x32x256xf32>
    %114 = vector.shape_cast %113 : vector<1x32x256xf32> to vector<32x256xf32>
    %115 = vector.extract_strided_slice %112 {offsets = [1, 0, 0], sizes = [1, 32, 256], strides = [1, 1, 1]} : vector<2x32x256xf32> to vector<1x32x256xf32>
    %116 = vector.shape_cast %115 : vector<1x32x256xf32> to vector<32x256xf32>
    %117 = tpu.concatenate %114, %116 in 1 : vector<32x256xf32>, vector<32x256xf32> -> vector<32x512xf32>
    %c0_12 = arith.constant 0 : index
    %c0_13 = arith.constant 0 : index
    %118 = vector.load %arg3[%c0_12, %c0_13] : memref<16x32xf32, #tpu.memory_space<vmem>>, vector<16x32xf32>
    %cst_14 = arith.constant dense<0.000000e+00> : vector<16x512xf32>
    %119 = tpu.matmul %118, %117, %cst_14 {dimension_numbers = #tpu.dot_dimension_numbers<[1], [0], [0], [1], [0, 0, 1, 1], [], []>} : vector<16x32xf32>, vector<32x512xf32>, vector<16x512xf32> -> vector<16x512xf32>
    %c0_15 = arith.constant 0 : index
    %c0_16 = arith.constant 0 : index
    %120 = vector.load %arg4[%c0_15, %c0_16] : memref<16x1xf32, #tpu.memory_space<vmem>>, vector<16x1xf32>
    %121 = vector.broadcast %120 : vector<16x1xf32> to vector<16x512xf32>
    %122 = arith.addf %119, %121 : vector<16x512xf32>
    %123 = vector.extract_strided_slice %122 {offsets = [0, 0], sizes = [16, 256], strides = [1, 1]} : vector<16x512xf32> to vector<16x256xf32>
    %c0_17 = arith.constant 0 : index
    %c0_18 = arith.constant 0 : index
    %c0_19 = arith.constant 0 : index
    %124 = vector.load %arg6[%c0_17, %c0_18, %c0_19] : memref<2x16x256xf32, #tpu.memory_space<vmem>>, vector<1x16x256xf32>
    %125 = vector.shape_cast %124 : vector<1x16x256xf32> to vector<16x256xf32>
    %126 = vector.shape_cast %123 : vector<16x256xf32> to vector<1x16x256xf32>
    tpu.vector_store %arg6[%c0_17, %c0_18, %c0_19], %126 {strides = array<i32>} : memref<2x16x256xf32, #tpu.memory_space<vmem>>, vector<1x16x256xf32>,
    %127 = vector.extract_strided_slice %122 {offsets = [0, 256], sizes = [16, 256], strides = [1, 1]} : vector<16x512xf32> to vector<16x256xf32>
    %c1 = arith.constant 1 : index
    %c0_20 = arith.constant 0 : index
    %c0_21 = arith.constant 0 : index
    %128 = vector.load %arg6[%c1, %c0_20, %c0_21] : memref<2x16x256xf32, #tpu.memory_space<vmem>>, vector<1x16x256xf32>
    %129 = vector.shape_cast %128 : vector<1x16x256xf32> to vector<16x256xf32>
    %130 = vector.shape_cast %127 : vector<16x256xf32> to vector<1x16x256xf32>
    tpu.vector_store %arg6[%c1, %c0_20, %c0_21], %130 {strides = array<i32>} : memref<2x16x256xf32, #tpu.memory_space<vmem>>, vector<1x16x256xf32>,
    return
  }
}

</mosaic_0001>

<bundles_post_ra>
// kernel: tpu_custom_call.1
= control target key start
LH: loop header
LB: loop body
LE: loop exit
PB: predicated region body
PF: predicated region fallthrough
CT: control target
= control target key end

     0   :  { %s2061_s27 = smov 17   ;;  %v2062_v3 = vmov 0   ;;  %s3811_s0 = inlined_call_operand.vmem [shape: f32[2,32,256], index: 0, kind: input, shape index: {}]   ;;  %s3812_s1 = inlined_call_operand.vmem [shape: f32[9,32,1], index: 1, kind: input, shape index: {}]   ;;  %s3813_s2 = inlined_call_operand.vmem [shape: f32[1,32,1], index: 2, kind: input, shape index: {}]   ;;  %s3814_s3 = inlined_call_operand.vmem [shape: f32[16,32], index: 3, kind: input, shape index: {}]   ;;  %s3815_s4 = inlined_call_operand.vmem [shape: f32[16,1], index: 4, kind: input, shape index: {}]   ;;  %s3816_s5 = inlined_call_operand.vmem [shape: f32[8,256], index: 5, kind: input, shape index: {}]   ;;  %s3817_s6 = inlined_call_operand.hbm [shape: f32[2,16,256], index: 6, kind: output, shape index: {}]  }
   0x1   :  { %v30_v0 = vld [vmem:[%s3811_s0 + $0x20] sm:$0xff]  ;;  %v28_v1 = vld [vmem:[%s3811_s0 + $0x10] sm:$0xff]  ;;  %2031 = vset.pattern.permute.xlu2 %v2062_v3  ;;  %2030 = vset.pattern.permute.xlu1 %v2062_v3 }
   0x2   :  { %v26_v2 = vld [vmem:[%s3811_s0] sm:$0xff]  ;;  %66 = vrot.lane.b32.xlu2 %v30_v0, %s2061_s27  ;;  %62 = vrot.lane.b32.xlu1 %v28_v1, %s2061_s27 }
   0x3   :  { %58 = vrot.lane.b32.xlu0 %v26_v2, %s2061_s27 }
   0x4   :  { %2032 = vset.pattern.permute.xlu0 %v2062_v3 }
   0x5   :  { %11 = vsyncpa [#allocation3], 0  ;;  %v31_v4 = vld [vmem:[%s3811_s0 + $0x28] sm:$0xff]  ;;  %v29_v5 = vld [vmem:[%s3811_s0 + $0x18] sm:$0xff]  ;;  %s2063_s9 = smov 1   ;;  %vm90_vm0 = vcmask 138240  }
   0x6   :  { %v27_v6 = vld [vmem:[%s3811_s0 + $0x8] sm:$0xff]  ;;  %v34_v7 = vld [vmem:[%s3811_s0 + $0x40] sm:$0xff]  ;;  %v33_v8 = vld [vmem:[%s3811_s0 + $0x38] sm:$0xff]  ;;  %s2064_s10 = smov 127   ;;  %vm321_vm1 = vcmask 7168   ;;  %vm422_vm2 = vcmask 1039360  }
   0x7   :  { %v32_v9 = vld [vmem:[%s3811_s0 + $0x30] sm:$0xff]  ;;  %v37_v10 = vld [vmem:[%s3811_s0 + $0x58] sm:$0xff]  ;;  %v35_v12 = vld [vmem:[%s3811_s0 + $0x48] sm:$0xff]  ;;  %s2066_s18 = smov 126   ;;  %vm523_vm3 = vcmask 15360   ;;  %s2067_s28 = smov 16  }
   0x8   :  { %v36_v11 = vld [vmem:[%s3811_s0 + $0x50] sm:$0xff]  ;;  %v39_v14 = vld [vmem:[%s3811_s0 + $0x68] sm:$0xff]  ;;  %v38_v15 = vld [vmem:[%s3811_s0 + $0x60] sm:$0xff]  ;;  %vm725_vm4 = vcmask 130048   ;;  %s2069_s13 = smov 111   ;;  %s2070_s20 = smov 18  }
   0x9   :  { %v40_v13 = vld [vmem:[%s3811_s0 + $0x70] sm:$0xff]  ;;  %v140_v16 = vld [vmem:[%s3812_s1 + $0x8] sm:$0xff]  ;;  %v139_v17 = vld [vmem:[%s3812_s1] sm:$0xff]  ;;  %vm624_vm5 = vcmask 1031168   ;;  %vm826_vm6 = vcmask 916480   ;;  %vm991_vm7 = vcmask 908288  }
   0xa   :  { %68 = vrot.lane.b32.xlu2 %v31_v4, %s2061_s27  ;;  %64 = vrot.lane.b32.xlu1 %v29_v5, %s2061_s27  ;;  %v41_v18 = vld [vmem:[%s3811_s0 + $0x78] sm:$0xff]  ;;  %v175_v19 = vld [vmem:[%s3813_s2] sm:$0xff]  ;;  %vm1092_vm8 = vcmask 146432   ;;  %s2071_s21 = smov 110   ;;  %s2072_s11 = smov 32   ;;  %vm1193_vm9 = vcmask 900096  }
   0xb   :  { %60 = vrot.lane.b32.xlu0 %v27_v6, %s2061_s27  ;;  %v142_v20 = vld [vmem:[%s3812_s1 + $0x18] sm:$0xff]  ;;  %v141_v21 = vld [vmem:[%s3812_s1 + $0x10] sm:$0xff]  ;;  %v176_v23 = vld [vmem:[%s3813_s2 + $0x8] sm:$0xff]  ;;  %vm1294_vm10 = vcmask 261120   ;;  %s2074_s16 = smov 33   ;;  %vm1395_vm11 = vcmask 785408  }
   0xc   :  { %v177_v22 = vld [vmem:[%s3813_s2 + $0x10] sm:$0xff]  ;;  %v178_v24 = vld [vmem:[%s3813_s2 + $0x18] sm:$0xff]  ;;  %v144_v25 = vld [vmem:[%s3812_s1 + $0x28] sm:$0xff]  ;;  %s2068_s2 = smov 112   ;;  %vm1496_vm12 = vcmask 269312   ;;  %vm1698_vm13 = vcmask 277504  }
   0xd   :  { %v143_v26 = vld [vmem:[%s3812_s1 + $0x20] sm:$0xff]  ;;  %v145_v27 = vld [vmem:[%s3812_s1 + $0x30] sm:$0xff]  ;;  %v2220_v29 = vld [vmem:[%s3816_s5 + $0x8] sm:$0xff]  ;;  %s2077_s29 = smov 94   ;;  %vm1597_vm14 = vcmask 777216   ;;  %vm1799_vm15 = vcmask 769024  }
   0xe   :  { %v2215_v28 = vld [vmem:[%s3816_s5] sm:$0xff]  ;;  %v146_v31 = vld [vmem:[%s3812_s1 + $0x38] sm:$0xff]  ;;  %v314_v32 = vperm.slane %v2220_v29, 1  ;;  %s2078_s14 = smov [#allocation2]  }
   0xf   :  { %v313_v30 = vperm.slane %v2215_v28, 1  ;;  %s1989_s15 = sshll.u32 %s2078_s14, 4  ;;  %s1990_s15 = int_to_ptr.vmem [resolvable:$true] %s1989_s15 }
  0x12   :  { %74 = vrot.lane.b32.xlu2 %v34_v7, %s2061_s27  ;;  %72 = vrot.lane.b32.xlu1 %v33_v8, %s2061_s27 }
  0x13   :  { %70 = vrot.lane.b32.xlu0 %v32_v9, %s2061_s27 }
  0x1a   :  { %80 = vrot.lane.b32.xlu2 %v37_v10, %s2061_s27  ;;  %78 = vrot.lane.b32.xlu1 %v36_v11, %s2061_s27 }
  0x1b   :  { %76 = vrot.lane.b32.xlu0 %v35_v12, %s2061_s27 }
  0x22   :  { %86 = vrot.lane.b32.xlu2 %v40_v13, %s2061_s27  ;;  %84 = vrot.lane.b32.xlu1 %v39_v14, %s2061_s27 }
  0x23   :  { %82 = vrot.lane.b32.xlu0 %v38_v15, %s2061_s27 }
  0x2a   :  { %186 = vperm.xlu2 %2031, %v140_v16   ;;  %181 = vperm.xlu1 %2030, %v139_v17  }
  0x2b   :  { %88 = vrot.lane.b32.xlu0 %v41_v18, %s2061_s27  ;;  %s2065_s27 = smov 2  }
  0x32   :  { %235 = vperm.xlu2 %2031, %v175_v19   ;;  %196 = vperm.xlu1 %2030, %v142_v20  }
  0x33   :  { %191 = vperm.xlu0 %2032, %v141_v21  }
  0x3a   :  { %245 = vperm.xlu2 %2031, %v177_v22   ;;  %240 = vperm.xlu1 %2030, %v176_v23  }
  0x3b   :  { %250 = vperm.xlu0 %2032, %v178_v24  }
  0x42   :  { %276 = vperm.xlu2 %2031, %v144_v25   ;;  %271 = vperm.xlu1 %2030, %v143_v26  }
  0x43   :  { %281 = vperm.xlu0 %2032, %v145_v27  }
  0x4a   :  { %286 = vperm.xlu1 %2030, %v146_v31   ;;  %317 = vrot.lane.b32.xlu2 %v313_v30, %s2063_s9 }
  0x4b   :  { %319 = vrot.lane.b32.xlu0 %v314_v32, %s2063_s9 }
  0x5c   :  { %v2227_v33 = vpop.permute.xlu2 %66 }
  0x5d   :  { %v2311_v11 = vsel %vm90_vm0, 0.0, %v2227_v33 }
  0x64   :  { %v2229_v34 = vpop.permute.xlu2 %68 }
  0x65   :  { %v2339_v22 = vsel %vm90_vm0, %v2229_v34, 0.0  ;;  %v2346_v24 = vsel %vm90_vm0, %v2227_v33, %v2229_v34 }
  0x66   :  { %3855 = vst [vmem:[#allocation11_spill] sm:$0xff] %v2346_v24 }
  0x6c   :  { %v2231_v35 = vpop.permute.xlu2 %74 }
  0x6d   :  { %v2364_v33 = vsel %vm90_vm0, 0.0, %v2231_v35 }
  0x74   :  { %v63_v36 = vpop.permute.xlu1 %62  ;;  %v2233_v38 = vpop.permute.xlu2 %80 }
  0x75   :  { %v59_v37 = vpop.permute.xlu0 %58  ;;  %v2286_v1 = vsel %vm90_vm0, 0.0, %v63_v36 }
  0x76   :  { %v2270_v58 = vsel %vm90_vm0, 0.0, %v59_v37 }
  0x7c   :  { %v65_v39 = vpop.permute.xlu1 %64  ;;  %v2235_v41 = vpop.permute.xlu2 %86 }
  0x7d   :  { %v61_v40 = vpop.permute.xlu0 %60  ;;  %v2314_v12 = vsel %vm90_vm0, %v65_v39, 0.0  ;;  %v2319_v14 = vsel %vm90_vm0, %v63_v36, %v65_v39 }
  0x7e   :  { %v2283_v0 = vsel %vm90_vm0, %v61_v40, 0.0  ;;  %v2289_v2 = vsel %vm90_vm0, %v59_v37, %v61_v40 }
  0x84   :  { %v2237_v42 = vpop.permute.xlu1 %72  ;;  %v2245_v46 = vpop.permute.xlu2 %186 }
  0x85   :  { %v2239_v43 = vpop.permute.xlu0 %70  ;;  %3849 = vst [vmem:[#allocation5_spill] sm:$0xff] %v2245_v46  ;;  %v2358_v32 = vsel %vm90_vm0, %v2237_v42, 0.0 }
  0x86   :  { %v2335_v21 = vsel %vm90_vm0, 0.0, %v2239_v43  ;;  %v2369_v34 = vsel %vm90_vm0, %v2239_v43, %v2237_v42 }
  0x8c   :  { %v2241_v44 = vpop.permute.xlu1 %78  ;;  %v2251_v49 = vpop.permute.xlu2 %235 }
  0x8d   :  { %v2243_v45 = vpop.permute.xlu0 %76  ;;  %v2389_v43 = vsel %vm90_vm0, 0.0, %v2241_v44 }
  0x8e   :  { %v2385_v42 = vsel %vm90_vm0, %v2243_v45, 0.0 }
  0x94   :  { %v2247_v47 = vpop.permute.xlu1 %84  ;;  %v2257_v52 = vpop.permute.xlu2 %245 }
  0x95   :  { %v2249_v48 = vpop.permute.xlu0 %82  ;;  %3850 = vst [vmem:[#allocation6_spill] sm:$0xff] %v2257_v52 }
  0x9c   :  { %v2253_v50 = vpop.permute.xlu1 %181  ;;  %v2263_v55 = vpop.permute.xlu2 %276 }
  0x9d   :  { %v2255_v51 = vpop.permute.xlu0 %88  ;;  %v292_v6 = vmul.f32 %v2263_v55, %v2286_v1  ;;  %v294_v15 = vmul.f32 %v2263_v55, %v2314_v12  ;;  %v293_v16 = vmul.f32 %v2263_v55, %v2319_v14 }
  0xa4   :  { %v2259_v53 = vpop.permute.xlu1 %196  ;;  %v2278_v62 = vpop.permute.xlu2 %317 }
  0xa5   :  { %3851 = vst [vmem:[#allocation7_spill] sm:$0xff] %v2259_v53  ;;  %v2261_v54 = vpop.permute.xlu0 %191  ;;  %v329_v10 = vmul.f32 %v2278_v62, %v292_v6 }
  0xa6   :  { %3852 = vst [vmem:[#allocation8_spill] sm:$0xff] %v2261_v54 }
  0xac   :  { %v2265_v56 = vpop.permute.xlu1 %240 }
  0xad   :  { %3853 = vst [vmem:[#allocation9_spill] sm:$0xff] %v2265_v56  ;;  %v2267_v57 = vpop.permute.xlu0 %250 }
  0xae   :  { %3854 = vst [vmem:[#allocation10_spill] sm:$0xff] %v2267_v57 }
  0xb4   :  { %v2272_v59 = vpop.permute.xlu1 %271 }
  0xb5   :  { %v2274_v60 = vpop.permute.xlu0 %281  ;;  %v289_v61 = vmul.f32 %v2272_v59, %v2270_v58  ;;  %v291_v3 = vmul.f32 %v2272_v59, %v2283_v0  ;;  %v290_v5 = vmul.f32 %v2272_v59, %v2289_v2  ;;  %v301_v39 = vmul.f32 %v2272_v59, %v2364_v33 }
  0xb6   :  { %v295_v13 = vmul.f32 %v2274_v60, %v2311_v11  ;;  %v297_v25 = vmul.f32 %v2274_v60, %v2339_v22  ;;  %v296_v26 = vmul.f32 %v2274_v60, %v2346_v24 }
  0xb7   :  { %v326_v63 = vmul.f32 %v2278_v62, %v289_v61 }
  0xb8   :  { %v332_v19 = vmul.f32 %v2278_v62, %v295_v13 }
  0xb9   :  { %374 = vrot.lane.b32.xlu1 %v326_v63, %s2064_s10  ;;  %v338_v63 = vmul.f32 %v2278_v62, %v301_v39  ;;  %v147_v39 = vld [vmem:[%s3812_s1 + $0x40] sm:$0xff] }
  0xbc   :  { %v2328_v20 = vpop.permute.xlu1 %286 }
  0xbd   :  { %v2293_v4 = vpop.permute.xlu0 %319  ;;  %v298_v23 = vmul.f32 %v2328_v20, %v2335_v21  ;;  %v300_v36 = vmul.f32 %v2328_v20, %v2358_v32  ;;  %v299_v37 = vmul.f32 %v2328_v20, %v2369_v34 }
  0xbe   :  { %v328_v7 = vmul.f32 %v2293_v4, %v291_v3  ;;  %v2302_v8 = vsel %vm321_vm1, %v2278_v62, %v2293_v4  ;;  %v331_v17 = vmul.f32 %v2293_v4, %v294_v15  ;;  %v334_v27 = vmul.f32 %v2293_v4, %v297_v25 }
  0xbf   :  { %v327_v9 = vmul.f32 %v2302_v8, %v290_v5  ;;  %v330_v18 = vmul.f32 %v2302_v8, %v293_v16  ;;  %v333_v30 = vmul.f32 %v2302_v8, %v296_v26  ;;  %v335_v31 = vmul.f32 %v2278_v62, %v298_v23 }
  0xc0   :  { %378 = vrot.lane.b32.xlu0 %v328_v7, %s2064_s10  ;;  %v337_v40 = vmul.f32 %v2293_v4, %v300_v36  ;;  %v336_v61 = vmul.f32 %v2302_v8, %v299_v37  ;;  %v2394_v3 = vsel %vm90_vm0, %v2231_v35, %v2243_v45  ;;  %v303_v5 = vmul.f32 %v2272_v59, %v2385_v42 }
  0xc1   :  { %376 = vrot.lane.b32.xlu2 %v327_v9, %s2064_s10  ;;  %380 = vrot.lane.b32.xlu1 %v329_v10, %s2064_s10  ;;  %v302_v6 = vmul.f32 %v2272_v59, %v2394_v3  ;;  %v304_v7 = vmul.f32 %v2263_v55, %v2389_v43  ;;  %v2410_v35 = vsel %vm90_vm0, 0.0, %v2249_v48  ;;  %v2414_v45 = vsel %vm90_vm0, %v2233_v38, 0.0 }
  0xc2   :  { %v340_v9 = vmul.f32 %v2293_v4, %v303_v5  ;;  %3856 = vst [vmem:[#allocation12_spill] sm:$0xff] %v2414_v45  ;;  %v307_v59 = vmul.f32 %v2274_v60, %v2410_v35  ;;  %v2421_v15 = vsel %vm90_vm0, %v2241_v44, %v2233_v38  ;;  %v306_v16 = vmul.f32 %v2263_v55, %v2414_v45 }
  0xc3   :  { %v339_v10 = vmul.f32 %v2302_v8, %v302_v6  ;;  %v341_v13 = vmul.f32 %v2278_v62, %v304_v7  ;;  %v2435_v38 = vsel %vm90_vm0, 0.0, %v2235_v41  ;;  %v2439_v44 = vsel %vm90_vm0, %v2247_v47, 0.0 }
  0xc4   :  { %v344_v23 = vmul.f32 %v2278_v62, %v307_v59  ;;  %v2446_v25 = vsel %vm90_vm0, %v2249_v48, %v2247_v47  ;;  %v309_v26 = vmul.f32 %v2274_v60, %v2439_v44  ;;  %v2458_v37 = vsel %vm90_vm0, %v2255_v51, 0.0 }
  0xc5   :  { %v2465_v47 = vsel %vm90_vm0, %v2235_v41, %v2255_v51  ;;  %v312_v48 = vmul.f32 %v2328_v20, %v2458_v37  ;;  %v149_v41 = vld [vmem:[%s3812_s1 + $0x50] sm:$0xff]  ;;  %v148_v51 = vld [vmem:[%s3812_s1 + $0x48] sm:$0xff]  ;;  %v2492_v6 = vperm.slane %v2215_v28, 0 }
  0xc7   :  { %3857 = vst [vmem:[#allocation13_spill] sm:$0xff] %v2492_v6 }
  0xc8   :  { %384 = vrot.lane.b32.xlu0 %v331_v17, %s2064_s10  ;;  %v305_v17 = vmul.f32 %v2263_v55, %v2421_v15  ;;  %v310_v55 = vmul.f32 %v2328_v20, %v2435_v38 }
  0xc9   :  { %382 = vrot.lane.b32.xlu2 %v330_v18, %s2064_s10  ;;  %386 = vrot.lane.b32.xlu1 %v332_v19, %s2064_s10  ;;  %v343_v18 = vmul.f32 %v2293_v4, %v306_v16  ;;  %v2499_v16 = vperm.slane %v2220_v29, 0 }
  0xca   :  { %v342_v19 = vmul.f32 %v2302_v8, %v305_v17  ;;  %v347_v36 = vmul.f32 %v2278_v62, %v310_v55  ;;  %v349_v62 = vmul.f32 %v2293_v4, %v312_v48 }
  0xcb   :  { %3858 = vst [vmem:[#allocation14_spill] sm:$0xff] %v2499_v16 }
  0xd0   :  { %390 = vrot.lane.b32.xlu0 %v334_v27, %s2064_s10  ;;  %v308_v27 = vmul.f32 %v2274_v60, %v2446_v25  ;;  %v311_v60 = vmul.f32 %v2328_v20, %v2465_v47  ;;  %v515_v20 = vperm.slane %v2215_v28, 2 }
  0xd1   :  { %388 = vrot.lane.b32.xlu2 %v333_v30, %s2064_s10  ;;  %392 = vrot.lane.b32.xlu1 %v335_v31, %s2064_s10  ;;  %v346_v30 = vmul.f32 %v2293_v4, %v309_v26  ;;  %v150_v4 = vld [vmem:[%s3812_s1 + $0x58] sm:$0xff] }
  0xd2   :  { %v345_v31 = vmul.f32 %v2302_v8, %v308_v27 }
  0xd8   :  { %396 = vrot.lane.b32.xlu0 %v337_v40, %s2064_s10  ;;  %v348_v40 = vmul.f32 %v2302_v8, %v311_v60  ;;  %v516_v8 = vperm.slane %v2220_v29, 2 }
  0xd9   :  { %394 = vrot.lane.b32.xlu2 %v336_v61, %s2064_s10  ;;  %398 = vrot.lane.b32.xlu1 %v338_v63, %s2064_s10  ;;  %v199_v63 = vmul.f32 %v2253_v50, %v2270_v58 }
  0xdb   :  { %v217_v7 = vmul.f32 %v2492_v6, %v199_v63 }
  0xdd   :  { %v253_v59 = vadd.f32 %v2251_v49, %v217_v7 }
  0xe0   :  { %402 = vrot.lane.b32.xlu0 %v340_v9, %s2064_s10  ;;  %v200_v9 = vmul.f32 %v2253_v50, %v2289_v2 }
  0xe1   :  { %400 = vrot.lane.b32.xlu2 %v339_v10, %s2064_s10  ;;  %404 = vrot.lane.b32.xlu1 %v341_v13, %s2064_s10 }
  0xe8   :  { %408 = vrot.lane.b32.xlu0 %v343_v18, %s2064_s10  ;;  %v201_v18 = vmul.f32 %v2245_v46, %v2286_v1 }
  0xe9   :  { %406 = vrot.lane.b32.xlu2 %v342_v19, %s2064_s10  ;;  %410 = vrot.lane.b32.xlu1 %v344_v23, %s2064_s10  ;;  %v218_v23 = vmul.f32 %v2499_v16, %v200_v9 }
  0xea   :  { %v219_v55 = vmul.f32 %v2492_v6, %v201_v18 }
  0xeb   :  { %v254_v27 = vadd.f32 %v2251_v49, %v218_v23 }
  0xec   :  { %v255_v60 = vadd.f32 %v2265_v56, %v219_v55 }
  0xf0   :  { %414 = vrot.lane.b32.xlu0 %v346_v30, %s2064_s10  ;;  %v203_v30 = vmul.f32 %v2261_v54, %v2311_v11 }
  0xf1   :  { %412 = vrot.lane.b32.xlu2 %v345_v31, %s2064_s10  ;;  %416 = vrot.lane.b32.xlu1 %v347_v36, %s2064_s10 }
  0xf8   :  { %420 = vrot.lane.b32.xlu0 %v349_v62, %s2064_s10  ;;  %v202_v62 = vmul.f32 %v2245_v46, %v2319_v14 }
  0xf9   :  { %418 = vrot.lane.b32.xlu2 %v348_v40, %s2064_s10  ;;  %473 = vperm.xlu1 %2030, %v147_v39  }
 0x100   :  { %483 = vperm.xlu0 %2032, %v149_v41  }
 0x101   :  { %478 = vperm.xlu2 %2031, %v148_v51   ;;  %488 = vperm.xlu1 %2030, %v150_v4   ;;  %v221_v51 = vmul.f32 %v2492_v6, %v203_v30  ;;  %v220_v4 = vmul.f32 %v2499_v16, %v202_v62  ;;  %v208_v62 = vmul.f32 %v2253_v50, %v2394_v3 }
 0x108   :  { %521 = vrot.lane.b32.xlu0 %v516_v8, %s2065_s27  ;;  %v204_v8 = vmul.f32 %v2261_v54, %v2346_v24 }
 0x109   :  { %519 = vrot.lane.b32.xlu2 %v515_v20, %s2065_s27  ;;  %s2075_s27 = smov 34  }
 0x10a   :  { %v222_v23 = vmul.f32 %v2499_v16, %v204_v8 }
 0x11b   :  { %v377_v61 = vpop.permute.xlu2 %376 }
 0x123   :  { %v383_v5 = vpop.permute.xlu2 %382 }
 0x12b   :  { %v389_v10 = vpop.permute.xlu2 %388  ;;  %v375_v13 = vpop.permute.xlu1 %374 }
 0x12c   :  { %v423_v17 = vsel %vm422_vm2, %v375_v13, %v377_v61  ;;  %v257_v13 = vadd.f32 %v2257_v52, %v221_v51 }
 0x12d   :  { %v2504_v19 = vadd.f32 %v423_v17, %v253_v59 }
 0x132   :  { %v379_v26 = vpop.permute.xlu0 %378 }
 0x133   :  { %v424_v31 = vsel %vm422_vm2, %v377_v61, %v379_v26  ;;  %v2512_v36 = vpop.permute.xlu2 %394  ;;  %v381_v48 = vpop.permute.xlu1 %380  ;;  %v256_v61 = vadd.f32 %v2265_v56, %v220_v4  ;;  %v258_v26 = vadd.f32 %v2257_v52, %v222_v23 }
 0x134   :  { %3859 = vst [vmem:[#allocation15_spill] sm:$0xff] %v2512_v36  ;;  %v2517_v39 = vadd.f32 %v424_v31, %v254_v27  ;;  %v425_v40 = vsel %vm422_vm2, %v381_v48, %v383_v5  ;;  %v207_v27 = vmul.f32 %v2253_v50, %v2364_v33 }
 0x135   :  { %v2520_v41 = vadd.f32 %v425_v40, %v255_v60 }
 0x136   :  { %v225_v60 = vmul.f32 %v2492_v6, %v207_v27 }
 0x138   :  { %v261_v4 = vadd.f32 %v2251_v49, %v225_v60 }
 0x13a   :  { %v385_v20 = vpop.permute.xlu0 %384 }
 0x13b   :  { %v426_v63 = vsel %vm422_vm2, %v383_v5, %v385_v20  ;;  %v401_v7 = vpop.permute.xlu2 %400  ;;  %v387_v9 = vpop.permute.xlu1 %386 }
 0x13c   :  { %v2529_v59 = vadd.f32 %v426_v63, %v256_v61  ;;  %v427_v17 = vsel %vm422_vm2, %v387_v9, %v389_v10 }
 0x13d   :  { %v2532_v18 = vadd.f32 %v427_v17, %v257_v13 }
 0x142   :  { %v391_v55 = vpop.permute.xlu0 %390 }
 0x143   :  { %v428_v5 = vsel %vm422_vm2, %v389_v10, %v391_v55  ;;  %v2539_v30 = vpop.permute.xlu1 %392  ;;  %v2543_v48 = vpop.permute.xlu2 %406  ;;  %v226_v10 = vmul.f32 %v2499_v16, %v208_v62 }
 0x144   :  { %3860 = vst [vmem:[#allocation16_spill] sm:$0xff] %v2539_v30  ;;  %v2541_v31 = vadd.f32 %v428_v5, %v258_v26 }
 0x145   :  { %3861 = vst [vmem:[#allocation17_spill] sm:$0xff] %v2543_v48  ;;  %v262_v9 = vadd.f32 %v2251_v49, %v226_v10 }
 0x14a   :  { %v2548_v40 = vpop.permute.xlu0 %396 }
 0x14b   :  { %3862 = vst [vmem:[#allocation18_spill] sm:$0xff] %v2548_v40  ;;  %v399_v51 = vpop.permute.xlu1 %398  ;;  %v2555_v61 = vpop.permute.xlu2 %412 }
 0x14c   :  { %v431_v8 = vsel %vm422_vm2, %v399_v51, %v401_v7  ;;  %3864 = vst [vmem:[#allocation20_spill] sm:$0xff] %v2555_v61 }
 0x14d   :  { %v2552_v20 = vadd.f32 %v431_v8, %v261_v4 }
 0x14f   :  { %3863 = vst [vmem:[#allocation19_spill] sm:$0xff] %v2552_v20 }
 0x152   :  { %v403_v63 = vpop.permute.xlu0 %402 }
 0x153   :  { %v432_v13 = vsel %vm422_vm2, %v401_v7, %v403_v63  ;;  %v2559_v17 = vpop.permute.xlu1 %404  ;;  %v2563_v23 = vpop.permute.xlu2 %418 }
 0x154   :  { %3865 = vst [vmem:[#allocation21_spill] sm:$0xff] %v2559_v17  ;;  %v2561_v50 = vadd.f32 %v432_v13, %v262_v9 }
 0x155   :  { %3867 = vst [vmem:[#allocation23_spill] sm:$0xff] %v2563_v23 }
 0x156   :  { %3866 = vst [vmem:[#allocation22_spill] sm:$0xff] %v2561_v50 }
 0x15a   :  { %v2565_v55 = vpop.permute.xlu0 %408 }
 0x15b   :  { %3868 = vst [vmem:[#allocation24_spill] sm:$0xff] %v2565_v55  ;;  %v2567_v26 = vpop.permute.xlu1 %410  ;;  %v2571_v5 = vpop.permute.xlu2 %478 }
 0x15c   :  { %3869 = vst [vmem:[#allocation25_spill] sm:$0xff] %v2567_v26  ;;  %v494_v10 = vmul.f32 %v2571_v5, %v2286_v1  ;;  %v496_v52 = vmul.f32 %v2571_v5, %v2314_v12 }
 0x162   :  { %v2569_v27 = vpop.permute.xlu0 %414 }
 0x163   :  { %3870 = vst [vmem:[#allocation26_spill] sm:$0xff] %v2569_v27  ;;  %v2573_v60 = vpop.permute.xlu1 %416  ;;  %v2578_v51 = vpop.permute.xlu2 %519 }
 0x164   :  { %3871 = vst [vmem:[#allocation27_spill] sm:$0xff] %v2573_v60  ;;  %v531_v63 = vmul.f32 %v2578_v51, %v494_v10 }
 0x16a   :  { %v2575_v62 = vpop.permute.xlu0 %420 }
 0x16b   :  { %3872 = vst [vmem:[#allocation28_spill] sm:$0xff] %v2575_v62  ;;  %v474_v49 = vpop.permute.xlu1 %473 }
 0x16c   :  { %v491_v7 = vmul.f32 %v474_v49, %v2270_v58  ;;  %v493_v9 = vmul.f32 %v474_v49, %v2283_v0  ;;  %v492_v62 = vmul.f32 %v474_v49, %v2289_v2 }
 0x16e   :  { %v528_v4 = vmul.f32 %v2578_v51, %v491_v7 }
 0x170   :  { %576 = vrot.lane.b32.xlu1 %v528_v4, %s2066_s18 }
 0x172   :  { %v2582_v8 = vpop.permute.xlu0 %483 }
 0x173   :  { %v497_v7 = vmul.f32 %v2582_v8, %v2311_v11  ;;  %v489_v23 = vpop.permute.xlu1 %488 }
 0x174   :  { %v500_v27 = vmul.f32 %v489_v23, %v2335_v21 }
 0x178   :  { %582 = vrot.lane.b32.xlu1 %v531_v63, %s2066_s18  ;;  %v534_v63 = vmul.f32 %v2578_v51, %v497_v7  ;;  %v537_v7 = vmul.f32 %v2578_v51, %v500_v27  ;;  %v502_v27 = vmul.f32 %v489_v23, %v2358_v32 }
 0x17a   :  { %v2589_v13 = vpop.permute.xlu0 %521 }
 0x17b   :  { %v530_v4 = vmul.f32 %v2589_v13, %v493_v9  ;;  %v2597_v60 = vsel %vm523_vm3, %v2578_v51, %v2589_v13  ;;  %v495_v9 = vmul.f32 %v2571_v5, %v2319_v14  ;;  %v533_v26 = vmul.f32 %v2589_v13, %v496_v52 }
 0x17c   :  { %v529_v10 = vmul.f32 %v2597_v60, %v492_v62 }
 0x17d   :  { %580 = vrot.lane.b32.xlu0 %v530_v4, %s2066_s18  ;;  %v532_v62 = vmul.f32 %v2597_v60, %v495_v9  ;;  %v499_v4 = vmul.f32 %v2582_v8, %v2339_v22 }
 0x17e   :  { %578 = vrot.lane.b32.xlu2 %v529_v10, %s2066_s18  ;;  %v498_v10 = vmul.f32 %v2582_v8, %v2346_v24 }
 0x17f   :  { %v536_v52 = vmul.f32 %v2589_v13, %v499_v4  ;;  %v506_v4 = vmul.f32 %v2571_v5, %v2389_v43 }
 0x180   :  { %588 = vrot.lane.b32.xlu1 %v534_v63, %s2066_s18  ;;  %v503_v63 = vmul.f32 %v474_v49, %v2364_v33  ;;  %v535_v9 = vmul.f32 %v2597_v60, %v498_v10 }
 0x181   :  { %v543_v10 = vmul.f32 %v2578_v51, %v506_v4 }
 0x185   :  { %586 = vrot.lane.b32.xlu0 %v533_v26, %s2066_s18  ;;  %v540_v26 = vmul.f32 %v2578_v51, %v503_v63  ;;  %v505_v63 = vmul.f32 %v474_v49, %v2385_v42 }
 0x186   :  { %584 = vrot.lane.b32.xlu2 %v532_v62, %s2066_s18  ;;  %v501_v62 = vmul.f32 %v489_v23, %v2369_v34 }
 0x188   :  { %594 = vrot.lane.b32.xlu1 %v537_v7, %s2066_s18  ;;  %v539_v7 = vmul.f32 %v2589_v13, %v502_v27  ;;  %v538_v61 = vmul.f32 %v2597_v60, %v501_v62  ;;  %v508_v62 = vmul.f32 %v2571_v5, %v2414_v45 }
 0x18a   :  { %v545_v4 = vmul.f32 %v2589_v13, %v508_v62 }
 0x18d   :  { %592 = vrot.lane.b32.xlu0 %v536_v52, %s2066_s18  ;;  %v504_v52 = vmul.f32 %v474_v49, %v2394_v3  ;;  %v507_v49 = vmul.f32 %v2571_v5, %v2421_v15  ;;  %v510_v5 = vmul.f32 %v2582_v8, %v2446_v25 }
 0x18e   :  { %590 = vrot.lane.b32.xlu2 %v535_v9, %s2066_s18  ;;  %v509_v9 = vmul.f32 %v2582_v8, %v2410_v35 }
 0x18f   :  { %v541_v27 = vmul.f32 %v2597_v60, %v504_v52  ;;  %v511_v52 = vmul.f32 %v2582_v8, %v2439_v44 }
 0x190   :  { %600 = vrot.lane.b32.xlu1 %v540_v26, %s2066_s18  ;;  %v542_v26 = vmul.f32 %v2589_v13, %v505_v63 }
 0x195   :  { %598 = vrot.lane.b32.xlu0 %v539_v7, %s2066_s18  ;;  %v512_v7 = vmul.f32 %v489_v23, %v2435_v38 }
 0x196   :  { %596 = vrot.lane.b32.xlu2 %v538_v61, %s2066_s18  ;;  %v546_v61 = vmul.f32 %v2578_v51, %v509_v9  ;;  %v548_v9 = vmul.f32 %v2589_v13, %v511_v52 }
 0x197   :  { %v549_v63 = vmul.f32 %v2578_v51, %v512_v7  ;;  %v514_v51 = vmul.f32 %v489_v23, %v2458_v37  ;;  %v153_v7 = vld [vmem:[%s3812_s1 + $0x70] sm:$0xff] }
 0x198   :  { %606 = vrot.lane.b32.xlu1 %v543_v10, %s2066_s18  ;;  %v544_v10 = vmul.f32 %v2597_v60, %v507_v49  ;;  %v154_v49 = vld [vmem:[%s3812_s1 + $0x78] sm:$0xff] }
 0x199   :  { %v551_v62 = vmul.f32 %v2589_v13, %v514_v51  ;;  %v717_v13 = vperm.slane %v2215_v28, 3 }
 0x19d   :  { %604 = vrot.lane.b32.xlu0 %v542_v26, %s2066_s18  ;;  %v547_v26 = vmul.f32 %v2597_v60, %v510_v5 }
 0x19e   :  { %602 = vrot.lane.b32.xlu2 %v541_v27, %s2066_s18  ;;  %v151_v27 = vld [vmem:[%s3812_s1 + $0x60] sm:$0xff] }
 0x1a0   :  { %612 = vrot.lane.b32.xlu1 %v546_v61, %s2066_s18  ;;  %v513_v61 = vmul.f32 %v489_v23, %v2465_v47  ;;  %v152_v23 = vld [vmem:[%s3812_s1 + $0x68] sm:$0xff] }
 0x1a2   :  { %v550_v8 = vmul.f32 %v2597_v60, %v513_v61  ;;  %v718_v60 = vperm.slane %v2220_v29, 3 }
 0x1a5   :  { %610 = vrot.lane.b32.xlu0 %v545_v4, %s2066_s18 }
 0x1a6   :  { %608 = vrot.lane.b32.xlu2 %v544_v10, %s2066_s18 }
 0x1a8   :  { %618 = vrot.lane.b32.xlu1 %v549_v63, %s2066_s18 }
 0x1ad   :  { %616 = vrot.lane.b32.xlu0 %v548_v9, %s2066_s18 }
 0x1ae   :  { %614 = vrot.lane.b32.xlu2 %v547_v26, %s2066_s18 }
 0x1b0   :  { %675 = vperm.xlu1 %2030, %v151_v27  }
 0x1b5   :  { %622 = vrot.lane.b32.xlu0 %v551_v62, %s2066_s18 }
 0x1b6   :  { %620 = vrot.lane.b32.xlu2 %v550_v8, %s2066_s18 }
 0x1b8   :  { %690 = vperm.xlu1 %2030, %v154_v49  }
 0x1bd   :  { %685 = vperm.xlu0 %2032, %v153_v7  }
 0x1be   :  { %680 = vperm.xlu2 %2031, %v152_v23  }
 0x1c5   :  { %723 = vrot.lane.b32.xlu0 %v718_v60, %s2067_s28 }
 0x1c6   :  { %721 = vrot.lane.b32.xlu2 %v717_v13, %s2067_s28 }
 0x1d8   :  { %v2687_v4 = vpop.permute.xlu2 %578 }
 0x1e0   :  { %v2689_v10 = vpop.permute.xlu2 %584 }
 0x1e2   :  { %v2691_v63 = vpop.permute.xlu1 %576 }
 0x1e8   :  { %v2693_v52 = vpop.permute.xlu2 %590 }
 0x1ea   :  { %v2695_v5 = vpop.permute.xlu1 %582 }
 0x1ef   :  { %v2697_v9 = vpop.permute.xlu0 %580 }
 0x1f0   :  { %v2699_v26 = vpop.permute.xlu2 %596 }
 0x1f1   :  { %3873 = vst [vmem:[#allocation29_spill] sm:$0xff] %v2699_v26 }
 0x1f2   :  { %v2701_v27 = vpop.permute.xlu1 %588 }
 0x1f7   :  { %v2703_v51 = vpop.permute.xlu0 %586 }
 0x1f8   :  { %v2705_v61 = vpop.permute.xlu2 %602 }
 0x1fa   :  { %v2707_v62 = vpop.permute.xlu1 %594 }
 0x1fb   :  { %3874 = vst [vmem:[#allocation30_spill] sm:$0xff] %v2707_v62 }
 0x1ff   :  { %v2709_v8 = vpop.permute.xlu0 %592 }
 0x200   :  { %v2711_v49 = vpop.permute.xlu2 %608 }
 0x201   :  { %3875 = vst [vmem:[#allocation31_spill] sm:$0xff] %v2711_v49 }
 0x202   :  { %v2713_v7 = vpop.permute.xlu1 %600 }
 0x207   :  { %v2715_v23 = vpop.permute.xlu0 %598 }
 0x208   :  { %3876 = vst [vmem:[#allocation32_spill] sm:$0xff] %v2715_v23  ;;  %v2717_v60 = vpop.permute.xlu2 %614 }
 0x209   :  { %3877 = vst [vmem:[#allocation33_spill] sm:$0xff] %v2717_v60 }
 0x20a   :  { %v2719_v13 = vpop.permute.xlu1 %606 }
 0x20b   :  { %3878 = vst [vmem:[#allocation34_spill] sm:$0xff] %v2719_v13 }
 0x20f   :  { %v2721_v56 = vpop.permute.xlu0 %604 }
 0x210   :  { %v2723_v54 = vpop.permute.xlu2 %620 }
 0x211   :  { %3879 = vst [vmem:[#allocation35_spill] sm:$0xff] %v2723_v54 }
 0x212   :  { %v2725_v55 = vpop.permute.xlu1 %612 }
 0x213   :  { %3880 = vst [vmem:[#allocation36_spill] sm:$0xff] %v2725_v55 }
 0x217   :  { %v2727_v17 = vpop.permute.xlu0 %610 }
 0x218   :  { %3881 = vst [vmem:[#allocation37_spill] sm:$0xff] %v2727_v17  ;;  %v2729_v48 = vpop.permute.xlu2 %680 }
 0x219   :  { %v696_v54 = vmul.f32 %v2729_v48, %v2286_v1  ;;  %v698_v36 = vmul.f32 %v2729_v48, %v2314_v12 }
 0x21a   :  { %v2731_v46 = vpop.permute.xlu1 %618 }
 0x21b   :  { %3882 = vst [vmem:[#allocation38_spill] sm:$0xff] %v2731_v46 }
 0x21f   :  { %v2733_v49 = vpop.permute.xlu0 %616 }
 0x220   :  { %3883 = vst [vmem:[#allocation39_spill] sm:$0xff] %v2733_v49  ;;  %v722_v60 = vpop.permute.xlu2 %721 }
 0x221   :  { %v733_v55 = vmul.f32 %v722_v60, %v696_v54 }
 0x222   :  { %v676_v62 = vpop.permute.xlu1 %675 }
 0x223   :  { %v693_v23 = vmul.f32 %v676_v62, %v2270_v58 }
 0x225   :  { %v730_v26 = vmul.f32 %v722_v60, %v693_v23  ;;  %v695_v23 = vmul.f32 %v676_v62, %v2283_v0 }
 0x227   :  { %v2736_v13 = vpop.permute.xlu0 %622  ;;  %778 = vrot.lane.b32.xlu1 %v730_v26, %s2068_s2  ;;  %v694_v26 = vmul.f32 %v676_v62, %v2289_v2 }
 0x228   :  { %3884 = vst [vmem:[#allocation40_spill] sm:$0xff] %v2736_v13 }
 0x22a   :  { %v2746_v57 = vpop.permute.xlu1 %690 }
 0x22b   :  { %v702_v30 = vmul.f32 %v2746_v57, %v2335_v21 }
 0x22f   :  { %v2741_v17 = vpop.permute.xlu0 %685  ;;  %784 = vrot.lane.b32.xlu1 %v733_v55, %s2068_s2 }
 0x230   :  { %v699_v46 = vmul.f32 %v2741_v17, %v2311_v11 }
 0x232   :  { %v736_v49 = vmul.f32 %v722_v60, %v699_v46  ;;  %v739_v46 = vmul.f32 %v722_v60, %v702_v30  ;;  %v701_v30 = vmul.f32 %v2741_v17, %v2339_v22 }
 0x237   :  { %v2749_v13 = vpop.permute.xlu0 %723  ;;  %790 = vrot.lane.b32.xlu1 %v736_v49, %s2068_s2  ;;  %v697_v49 = vmul.f32 %v2729_v48, %v2319_v14 }
 0x238   :  { %v732_v54 = vmul.f32 %v2749_v13, %v695_v23  ;;  %v726_v40 = vsel %vm725_vm4, %v722_v60, %v2749_v13  ;;  %v735_v23 = vmul.f32 %v2749_v13, %v698_v36  ;;  %v708_v36 = vmul.f32 %v2729_v48, %v2389_v43 }
 0x239   :  { %v731_v55 = vmul.f32 %v726_v40, %v694_v26  ;;  %v734_v16 = vmul.f32 %v726_v40, %v697_v49  ;;  %v705_v26 = vmul.f32 %v676_v62, %v2364_v33  ;;  %v704_v49 = vmul.f32 %v2746_v57, %v2358_v32 }
 0x23a   :  { %782 = vrot.lane.b32.xlu0 %v732_v54, %s2068_s2 }
 0x23b   :  { %780 = vrot.lane.b32.xlu2 %v731_v55, %s2068_s2  ;;  %v742_v54 = vmul.f32 %v722_v60, %v705_v26  ;;  %v700_v55 = vmul.f32 %v2741_v17, %v2346_v24  ;;  %v741_v26 = vmul.f32 %v2749_v13, %v704_v49  ;;  %v714_v49 = vmul.f32 %v2746_v57, %v2435_v38 }
 0x23d   :  { %v737_v6 = vmul.f32 %v726_v40, %v700_v55  ;;  %v707_v55 = vmul.f32 %v676_v62, %v2385_v42 }
 0x23f   :  { %796 = vrot.lane.b32.xlu1 %v739_v46, %s2068_s2  ;;  %v738_v46 = vmul.f32 %v2749_v13, %v701_v30  ;;  %v711_v30 = vmul.f32 %v2741_v17, %v2410_v35 }
 0x242   :  { %788 = vrot.lane.b32.xlu0 %v735_v23, %s2068_s2  ;;  %v703_v23 = vmul.f32 %v2746_v57, %v2369_v34 }
 0x243   :  { %786 = vrot.lane.b32.xlu2 %v734_v16, %s2068_s2  ;;  %v745_v16 = vmul.f32 %v722_v60, %v708_v36  ;;  %v744_v36 = vmul.f32 %v2749_v13, %v707_v55  ;;  %v712_v55 = vmul.f32 %v2741_v17, %v2446_v25 }
 0x247   :  { %802 = vrot.lane.b32.xlu1 %v742_v54, %s2068_s2  ;;  %v740_v54 = vmul.f32 %v726_v40, %v703_v23  ;;  %v751_v23 = vmul.f32 %v722_v60, %v714_v49  ;;  %v715_v49 = vmul.f32 %v2746_v57, %v2465_v47 }
 0x24a   :  { %794 = vrot.lane.b32.xlu0 %v738_v46, %s2068_s2  ;;  %v706_v46 = vmul.f32 %v676_v62, %v2394_v3 }
 0x24b   :  { %792 = vrot.lane.b32.xlu2 %v737_v6, %s2068_s2  ;;  %v748_v6 = vmul.f32 %v722_v60, %v711_v30  ;;  %v713_v60 = vmul.f32 %v2741_v17, %v2439_v44 }
 0x24f   :  { %808 = vrot.lane.b32.xlu1 %v745_v16, %s2068_s2  ;;  %v743_v16 = vmul.f32 %v726_v40, %v706_v46  ;;  %v749_v46 = vmul.f32 %v726_v40, %v712_v55 }
 0x252   :  { %800 = vrot.lane.b32.xlu0 %v741_v26, %s2068_s2  ;;  %v710_v26 = vmul.f32 %v2729_v48, %v2414_v45 }
 0x253   :  { %798 = vrot.lane.b32.xlu2 %v740_v54, %s2068_s2  ;;  %v709_v54 = vmul.f32 %v2729_v48, %v2421_v15  ;;  %v750_v48 = vmul.f32 %v2749_v13, %v713_v60 }
 0x254   :  { %v747_v62 = vmul.f32 %v2749_v13, %v710_v26  ;;  %v157_v26 = vld [vmem:[%s3812_s1 + $0x90] sm:$0xff] }
 0x255   :  { %v746_v30 = vmul.f32 %v726_v40, %v709_v54  ;;  %v156_v54 = vld [vmem:[%s3812_s1 + $0x88] sm:$0xff] }
 0x257   :  { %814 = vrot.lane.b32.xlu1 %v748_v6, %s2068_s2  ;;  %v155_v6 = vld [vmem:[%s3812_s1 + $0x80] sm:$0xff] }
 0x25a   :  { %806 = vrot.lane.b32.xlu0 %v744_v36, %s2068_s2  ;;  %v158_v36 = vld [vmem:[%s3812_s1 + $0x98] sm:$0xff] }
 0x25b   :  { %804 = vrot.lane.b32.xlu2 %v743_v16, %s2068_s2  ;;  %v716_v16 = vmul.f32 %v2746_v57, %v2458_v37 }
 0x25d   :  { %v753_v17 = vmul.f32 %v2749_v13, %v716_v16 }
 0x25f   :  { %820 = vrot.lane.b32.xlu1 %v751_v23, %s2068_s2  ;;  %v752_v23 = vmul.f32 %v726_v40, %v715_v49 }
 0x262   :  { %812 = vrot.lane.b32.xlu0 %v747_v62, %s2068_s2 }
 0x263   :  { %810 = vrot.lane.b32.xlu2 %v746_v30, %s2068_s2 }
 0x267   :  { %877 = vperm.xlu1 %2030, %v155_v6  }
 0x26a   :  { %818 = vrot.lane.b32.xlu0 %v750_v48, %s2068_s2 }
 0x26b   :  { %816 = vrot.lane.b32.xlu2 %v749_v46, %s2068_s2 }
 0x26f   :  { %892 = vperm.xlu1 %2030, %v158_v36  }
 0x272   :  { %824 = vrot.lane.b32.xlu0 %v753_v17, %s2068_s2 }
 0x273   :  { %822 = vrot.lane.b32.xlu2 %v752_v23, %s2068_s2 }
 0x27a   :  { %887 = vperm.xlu0 %2032, %v157_v26  }
 0x27b   :  { %882 = vperm.xlu2 %2031, %v156_v54  }
 0x295   :  { %v2830_v62 = vpop.permute.xlu2 %780 }
 0x299   :  { %v2832_v57 = vpop.permute.xlu1 %778 }
 0x29d   :  { %v2834_v13 = vpop.permute.xlu2 %786 }
 0x2a1   :  { %v2836_v40 = vpop.permute.xlu1 %784 }
 0x2a5   :  { %v2838_v30 = vpop.permute.xlu2 %792 }
 0x2a9   :  { %v2840_v6 = vpop.permute.xlu1 %790 }
 0x2ac   :  { %v2842_v60 = vpop.permute.xlu0 %782 }
 0x2ad   :  { %v2844_v55 = vpop.permute.xlu2 %798 }
 0x2ae   :  { %3885 = vst [vmem:[#allocation41_spill] sm:$0xff] %v2844_v55 }
 0x2b1   :  { %v2846_v48 = vpop.permute.xlu1 %796 }
 0x2b2   :  { %3886 = vst [vmem:[#allocation42_spill] sm:$0xff] %v2846_v48 }
 0x2b4   :  { %v2848_v46 = vpop.permute.xlu0 %788 }
 0x2b5   :  { %v2850_v36 = vpop.permute.xlu2 %804 }
 0x2b6   :  { %3887 = vst [vmem:[#allocation43_spill] sm:$0xff] %v2850_v36 }
 0x2b9   :  { %v2852_v16 = vpop.permute.xlu1 %802 }
 0x2ba   :  { %3888 = vst [vmem:[#allocation44_spill] sm:$0xff] %v2852_v16 }
 0x2bc   :  { %v2854_v49 = vpop.permute.xlu0 %794 }
 0x2bd   :  { %v2856_v17 = vpop.permute.xlu2 %810 }
 0x2be   :  { %3889 = vst [vmem:[#allocation45_spill] sm:$0xff] %v2856_v17 }
 0x2c1   :  { %v2858_v23 = vpop.permute.xlu1 %808 }
 0x2c2   :  { %3890 = vst [vmem:[#allocation46_spill] sm:$0xff] %v2858_v23 }
 0x2c4   :  { %v2860_v26 = vpop.permute.xlu0 %800 }
 0x2c5   :  { %3891 = vst [vmem:[#allocation47_spill] sm:$0xff] %v2860_v26  ;;  %v2864_v53 = vpop.permute.xlu2 %816 }
 0x2c6   :  { %3893 = vst [vmem:[#allocation49_spill] sm:$0xff] %v2864_v53 }
 0x2c9   :  { %v2862_v54 = vpop.permute.xlu1 %814 }
 0x2ca   :  { %3892 = vst [vmem:[#allocation48_spill] sm:$0xff] %v2862_v54 }
 0x2cc   :  { %v2866_v55 = vpop.permute.xlu0 %806 }
 0x2cd   :  { %v2872_v20 = vpop.permute.xlu2 %822 }
 0x2ce   :  { %3896 = vst [vmem:[#allocation52_spill] sm:$0xff] %v2872_v20 }
 0x2d1   :  { %v2868_v48 = vpop.permute.xlu1 %820 }
 0x2d2   :  { %3894 = vst [vmem:[#allocation50_spill] sm:$0xff] %v2868_v48 }
 0x2d4   :  { %v2870_v50 = vpop.permute.xlu0 %812 }
 0x2d5   :  { %3895 = vst [vmem:[#allocation51_spill] sm:$0xff] %v2870_v50  ;;  %v883_v48 = vpop.permute.xlu2 %882 }
 0x2d6   :  { %v900_v54 = vmul.f32 %v883_v48, %v2314_v12  ;;  %v899_v20 = vmul.f32 %v883_v48, %v2319_v14  ;;  %v898_v53 = vmul.f32 %v883_v48, %v2286_v1 }
 0x2d9   :  { %v878_v16 = vpop.permute.xlu1 %877 }
 0x2da   :  { %v897_v36 = vmul.f32 %v878_v16, %v2283_v0  ;;  %v896_v17 = vmul.f32 %v878_v16, %v2289_v2  ;;  %v895_v23 = vmul.f32 %v878_v16, %v2270_v58 }
 0x2dc   :  { %v2877_v26 = vpop.permute.xlu0 %818  ;;  %947 = vrot.lane.b32.xlu1 %v897_v36, %s2069_s13  ;;  %945 = vrot.lane.b32.xlu0 %v896_v17, %s2069_s13 }
 0x2dd   :  { %3897 = vst [vmem:[#allocation53_spill] sm:$0xff] %v2877_v26  ;;  %943 = vrot.lane.b32.xlu2 %v895_v23, %s2069_s13 }
 0x2e4   :  { %v2885_v50 = vpop.permute.xlu0 %824  ;;  %953 = vrot.lane.b32.xlu1 %v900_v54, %s2069_s13  ;;  %951 = vrot.lane.b32.xlu0 %v899_v20, %s2069_s13 }
 0x2e5   :  { %3898 = vst [vmem:[#allocation54_spill] sm:$0xff] %v2885_v50  ;;  %949 = vrot.lane.b32.xlu2 %v898_v53, %s2069_s13  ;;  %v893_v50 = vpop.permute.xlu1 %892 }
 0x2e6   :  { %v906_v54 = vmul.f32 %v893_v50, %v2358_v32  ;;  %v905_v20 = vmul.f32 %v893_v50, %v2369_v34  ;;  %v904_v53 = vmul.f32 %v893_v50, %v2335_v21 }
 0x2ec   :  { %v888_v36 = vpop.permute.xlu0 %887 }
 0x2ed   :  { %v903_v17 = vmul.f32 %v888_v36, %v2339_v22  ;;  %v902_v23 = vmul.f32 %v888_v36, %v2346_v24  ;;  %v901_v26 = vmul.f32 %v888_v36, %v2311_v11  ;;  %v909_v24 = vmul.f32 %v878_v16, %v2385_v42 }
 0x2ef   :  { %959 = vrot.lane.b32.xlu1 %v903_v17, %s2069_s13  ;;  %957 = vrot.lane.b32.xlu0 %v902_v23, %s2069_s13  ;;  %v908_v17 = vmul.f32 %v878_v16, %v2394_v3  ;;  %v907_v23 = vmul.f32 %v878_v16, %v2364_v33  ;;  %v915_v16 = vmul.f32 %v888_v36, %v2439_v44 }
 0x2f0   :  { %955 = vrot.lane.b32.xlu2 %v901_v26, %s2069_s13  ;;  %v912_v26 = vmul.f32 %v883_v48, %v2414_v45 }
 0x2f7   :  { %965 = vrot.lane.b32.xlu1 %v906_v54, %s2069_s13  ;;  %963 = vrot.lane.b32.xlu0 %v905_v20, %s2069_s13  ;;  %v911_v54 = vmul.f32 %v883_v48, %v2421_v15  ;;  %v910_v20 = vmul.f32 %v883_v48, %v2389_v43  ;;  %v918_v48 = vmul.f32 %v893_v50, %v2458_v37 }
 0x2f8   :  { %961 = vrot.lane.b32.xlu2 %v904_v53, %s2069_s13  ;;  %v913_v53 = vmul.f32 %v888_v36, %v2410_v35 }
 0x2ff   :  { %971 = vrot.lane.b32.xlu1 %v909_v24, %s2069_s13  ;;  %969 = vrot.lane.b32.xlu0 %v908_v17, %s2069_s13  ;;  %v914_v24 = vmul.f32 %v888_v36, %v2446_v25  ;;  %v917_v17 = vmul.f32 %v893_v50, %v2465_v47  ;;  %v161_v36 = vld [vmem:[%s3812_s1 + $0xb0] sm:$0xff] }
 0x300   :  { %967 = vrot.lane.b32.xlu2 %v907_v23, %s2069_s13  ;;  %v916_v23 = vmul.f32 %v893_v50, %v2435_v38  ;;  %v1085_v50 = vperm.slane %v2220_v29, 4  ;;  %v626_v29 = vsel %vm624_vm5, %v2687_v4, %v2697_v9 }
 0x307   :  { %977 = vrot.lane.b32.xlu1 %v912_v26, %s2069_s13  ;;  %975 = vrot.lane.b32.xlu0 %v911_v54, %s2069_s13  ;;  %v160_v26 = vld [vmem:[%s3812_s1 + $0xa8] sm:$0xff]  ;;  %v159_v54 = vld [vmem:[%s3812_s1 + $0xa0] sm:$0xff] }
 0x308   :  { %973 = vrot.lane.b32.xlu2 %v910_v20, %s2069_s13  ;;  %v1084_v20 = vperm.slane %v2215_v28, 4  ;;  %v827_v28 = vsel %vm826_vm6, %v2832_v57, %v2830_v62 }
 0x30f   :  { %983 = vrot.lane.b32.xlu1 %v915_v16, %s2069_s13  ;;  %981 = vrot.lane.b32.xlu0 %v914_v24, %s2069_s13  ;;  %v162_v16 = vld [vmem:[%s3812_s1 + $0xb8] sm:$0xff] }
 0x310   :  { %979 = vrot.lane.b32.xlu2 %v913_v53, %s2069_s13  ;;  %v625_v53 = vsel %vm624_vm5, %v2691_v63, %v2687_v4 }
 0x317   :  { %989 = vrot.lane.b32.xlu1 %v918_v48, %s2069_s13  ;;  %987 = vrot.lane.b32.xlu0 %v917_v17, %s2069_s13  ;;  %v828_v48 = vsel %vm826_vm6, %v2830_v62, %v2842_v60  ;;  %v657_v17 = vadd.f32 %v625_v53, %v2504_v19  ;;  %v627_v19 = vsel %vm624_vm5, %v2695_v5, %v2689_v10 }
 0x318   :  { %985 = vrot.lane.b32.xlu2 %v916_v23, %s2069_s13  ;;  %v658_v23 = vadd.f32 %v626_v29, %v2517_v39  ;;  %v628_v39 = vsel %vm624_vm5, %v2689_v10, %v2703_v51  ;;  %v829_v62 = vsel %vm826_vm6, %v2836_v40, %v2834_v13  ;;  %v830_v60 = vsel %vm826_vm6, %v2834_v13, %v2848_v46  ;;  %s1991_s13 = sshll.u32 %s3817_s6, 4  ;;  %s1992_s13 = int_to_ptr.hbm [resolvable:$true] %s1991_s13 }
 0x319   :  { %v629_v13 = vsel %vm624_vm5, %v2701_v27, %v2693_v52  ;;  %v832_v46 = vsel %vm826_vm6, %v2838_v30, %v2854_v49  ;;  %v633_v49 = vsel %vm624_vm5, %v2713_v7, %v2705_v61 }
 0x31a   :  { %v860_v63 = vadd.f32 %v828_v48, %v658_v23  ;;  %v661_v23 = vadd.f32 %v629_v13, %v2532_v18 }
 0x31f   :  { %1052 = vperm.xlu1 %2030, %v161_v36   ;;  %1047 = vperm.xlu0 %2032, %v160_v26   ;;  %v859_v26 = vadd.f32 %v827_v28, %v657_v17 }
 0x320   :  { %1042 = vperm.xlu2 %2031, %v159_v54  }
 0x327   :  { %1090 = vrot.lane.b32.xlu1 %v1085_v50, %s2070_s20  ;;  %1088 = vrot.lane.b32.xlu0 %v1084_v20, %s2070_s20 }
 0x328   :  { %1057 = vperm.xlu2 %2031, %v162_v16   ;;  %v659_v16 = vadd.f32 %v627_v19, %v2520_v41  ;;  %v630_v41 = vsel %vm624_vm5, %v2693_v52, %v2709_v8 }
 0x32a   :  { %v861_v29 = vadd.f32 %v829_v62, %v659_v16  ;;  %v3899_v62 = vld [vmem:[#allocation43_spill] sm:$0xff] }
 0x337   :  { %v944_v24 = vpop.permute.xlu2 %943 }
 0x33f   :  { %v950_v36 = vpop.permute.xlu2 %949 }
 0x34a   :  { %v956_v53 = vpop.permute.xlu2 %955 }
 0x34e   :  { %v946_v54 = vpop.permute.xlu0 %945  ;;  %v948_v50 = vpop.permute.xlu1 %947 }
 0x34f   :  { %v992_v4 = vsel %vm991_vm7, %v944_v24, %v946_v54  ;;  %v993_v9 = vsel %vm991_vm7, %v946_v54, %v948_v50  ;;  %v660_v24 = vadd.f32 %v628_v39, %v2529_v59  ;;  %v831_v59 = vsel %vm826_vm6, %v2840_v6, %v2838_v30 }
 0x350   :  { %v2956_v20 = vadd.f32 %v992_v4, %v859_v26  ;;  %v2958_v57 = vadd.f32 %v993_v9, %v860_v63  ;;  %v863_v63 = vadd.f32 %v831_v59, %v661_v23  ;;  %v634_v39 = vsel %vm624_vm5, %v2705_v61, %v2721_v56 }
 0x351   :  { %v862_v28 = vadd.f32 %v830_v60, %v660_v24  ;;  %v3900_v60 = vld [vmem:[#allocation44_spill] sm:$0xff]  ;;  %v836_v24 = vsel %vm826_vm6, %v3899_v62, %v2866_v55 }
 0x352   :  { %v962_v26 = vpop.permute.xlu2 %961  ;;  %v835_v16 = vsel %vm826_vm6, %v3900_v60, %v3899_v62 }
 0x356   :  { %v954_v5 = vpop.permute.xlu1 %953  ;;  %v952_v48 = vpop.permute.xlu0 %951 }
 0x357   :  { %v994_v17 = vsel %vm991_vm7, %v950_v36, %v952_v48  ;;  %v995_v10 = vsel %vm991_vm7, %v952_v48, %v954_v5  ;;  %v662_v36 = vadd.f32 %v630_v41, %v2541_v31 }
 0x358   :  { %v2976_v51 = vadd.f32 %v994_v17, %v861_v29  ;;  %v2978_v40 = vadd.f32 %v995_v10, %v862_v28  ;;  %v3902_v28 = vld [vmem:[#allocation22_spill] sm:$0xff] }
 0x359   :  { %v864_v54 = vadd.f32 %v832_v46, %v662_v36  ;;  %v666_v5 = vadd.f32 %v634_v39, %v3902_v28 }
 0x35a   :  { %v968_v30 = vpop.permute.xlu2 %967 }
 0x35b   :  { %v868_v17 = vadd.f32 %v836_v24, %v666_v5 }
 0x361   :  { %v960_v27 = vpop.permute.xlu1 %959  ;;  %v958_v50 = vpop.permute.xlu0 %957 }
 0x362   :  { %v996_v4 = vsel %vm991_vm7, %v956_v53, %v958_v50  ;;  %v997_v52 = vsel %vm991_vm7, %v958_v50, %v960_v27  ;;  %v3901_v53 = vld [vmem:[#allocation19_spill] sm:$0xff]  ;;  %v974_v59 = vpop.permute.xlu2 %973 }
 0x363   :  { %v2996_v8 = vadd.f32 %v996_v4, %v863_v63  ;;  %v2998_v6 = vadd.f32 %v997_v52, %v864_v54  ;;  %v665_v29 = vadd.f32 %v633_v49, %v3901_v53 }
 0x365   :  { %v867_v48 = vadd.f32 %v835_v16, %v665_v29 }
 0x369   :  { %v966_v9 = vpop.permute.xlu1 %965  ;;  %v964_v19 = vpop.permute.xlu0 %963 }
 0x36a   :  { %v3001_v18 = vsel %vm991_vm7, %v962_v26, %v964_v19  ;;  %v3004_v31 = vsel %vm991_vm7, %v964_v19, %v966_v9  ;;  %v980_v26 = vpop.permute.xlu2 %979 }
 0x371   :  { %v972_v10 = vpop.permute.xlu1 %971  ;;  %v970_v7 = vpop.permute.xlu0 %969 }
 0x372   :  { %v1000_v13 = vsel %vm991_vm7, %v968_v30, %v970_v7  ;;  %v1001_v56 = vsel %vm991_vm7, %v970_v7, %v972_v10  ;;  %v986_v4 = vpop.permute.xlu2 %985 }
 0x373   :  { %v3022_v61 = vadd.f32 %v1000_v13, %v867_v48  ;;  %v3024_v41 = vadd.f32 %v1001_v56, %v868_v17 }
 0x379   :  { %v978_v46 = vpop.permute.xlu1 %977  ;;  %v976_v23 = vpop.permute.xlu0 %975 }
 0x37a   :  { %v3027_v55 = vsel %vm991_vm7, %v974_v59, %v976_v23  ;;  %v3030_v36 = vsel %vm991_vm7, %v976_v23, %v978_v46  ;;  %v1043_v62 = vpop.permute.xlu2 %1042 }
 0x37b   :  { %v1062_v60 = vmul.f32 %v1043_v62, %v2283_v0  ;;  %v1060_v16 = vmul.f32 %v1043_v62, %v2270_v58  ;;  %v1061_v29 = vmul.f32 %v1043_v62, %v2289_v2 }
 0x381   :  { %v984_v63 = vpop.permute.xlu1 %983  ;;  %v982_v54 = vpop.permute.xlu0 %981 }
 0x382   :  { %v3033_v27 = vsel %vm991_vm7, %v980_v26, %v982_v54  ;;  %v3036_v50 = vsel %vm991_vm7, %v982_v54, %v984_v63  ;;  %v3903_v63 = vld [vmem:[#allocation11_spill] sm:$0xff] }
 0x389   :  { %v990_v52 = vpop.permute.xlu1 %989  ;;  %v988_v9 = vpop.permute.xlu0 %987 }
 0x38a   :  { %v3039_v19 = vsel %vm991_vm7, %v986_v4, %v988_v9  ;;  %v3042_v30 = vsel %vm991_vm7, %v988_v9, %v990_v52 }
 0x391   :  { %v3044_v49 = vpop.permute.xlu1 %1052  ;;  %v1048_v39 = vpop.permute.xlu0 %1047 }
 0x392   :  { %v1065_v10 = vmul.f32 %v1048_v39, %v2314_v12  ;;  %v1063_v7 = vmul.f32 %v1048_v39, %v2286_v1  ;;  %v1064_v13 = vmul.f32 %v1048_v39, %v2319_v14  ;;  %v1068_v23 = vmul.f32 %v3044_v49, %v2339_v22 }
 0x393   :  { %v1066_v26 = vmul.f32 %v3044_v49, %v2311_v11  ;;  %v1067_v54 = vmul.f32 %v3044_v49, %v3903_v63 }
 0x399   :  { %v3048_v24 = vpop.permute.xlu1 %1090  ;;  %v3050_v53 = vpop.permute.xlu0 %1088 }
 0x39a   :  { %v1099_v28 = vmul.f32 %v3048_v24, %v1062_v60  ;;  %v1097_v5 = vmul.f32 %v3050_v53, %v1060_v16  ;;  %v3057_v48 = vsel %vm1092_vm8, %v3050_v53, %v3048_v24  ;;  %v1102_v56 = vmul.f32 %v3048_v24, %v1065_v10  ;;  %v1058_v60 = vpop.permute.xlu2 %1057 }
 0x39b   :  { %v1098_v17 = vmul.f32 %v3057_v48, %v1061_v29  ;;  %v1100_v59 = vmul.f32 %v3050_v53, %v1063_v7  ;;  %v1101_v46 = vmul.f32 %v3057_v48, %v1064_v13  ;;  %v1105_v4 = vmul.f32 %v3048_v24, %v1068_v23 }
 0x39c   :  { %1149 = vrot.lane.b32.xlu1 %v1099_v28, %s2071_s21  ;;  %1145 = vrot.lane.b32.xlu2 %v1097_v5, %s2071_s21  ;;  %v1103_v52 = vmul.f32 %v3050_v53, %v1066_v26  ;;  %v1104_v9 = vmul.f32 %v3057_v48, %v1067_v54  ;;  %v1071_v16 = vmul.f32 %v1058_v60, %v2358_v32 }
 0x39d   :  { %1147 = vrot.lane.b32.xlu0 %v1098_v17, %s2071_s21  ;;  %v1069_v29 = vmul.f32 %v1058_v60, %v2335_v21  ;;  %v1070_v28 = vmul.f32 %v1058_v60, %v2369_v34  ;;  %v1074_v7 = vmul.f32 %v1043_v62, %v2385_v42  ;;  %v1072_v13 = vmul.f32 %v1043_v62, %v2364_v33 }
 0x39e   :  { %v1108_v5 = vmul.f32 %v3048_v24, %v1071_v16  ;;  %v1077_v26 = vmul.f32 %v1048_v39, %v2414_v45  ;;  %v1075_v54 = vmul.f32 %v1048_v39, %v2389_v43  ;;  %v1080_v16 = vmul.f32 %v3044_v49, %v2439_v44 }
 0x39f   :  { %v1106_v17 = vmul.f32 %v3050_v53, %v1069_v29  ;;  %v1107_v10 = vmul.f32 %v3057_v48, %v1070_v28  ;;  %v1078_v29 = vmul.f32 %v3044_v49, %v2410_v35 }
 0x3a0   :  { %v1117_v28 = vmul.f32 %v3048_v24, %v1080_v16 }
 0x3a4   :  { %1155 = vrot.lane.b32.xlu1 %v1102_v56, %s2071_s21  ;;  %1151 = vrot.lane.b32.xlu2 %v1100_v59, %s2071_s21  ;;  %v1073_v56 = vmul.f32 %v1043_v62, %v2394_v3  ;;  %v1111_v59 = vmul.f32 %v3048_v24, %v1074_v7  ;;  %v1114_v62 = vmul.f32 %v3048_v24, %v1077_v26  ;;  %v3153_v26 = vld [vmem:[%s3816_s5] sm:$0xff] }
 0x3a5   :  { %1153 = vrot.lane.b32.xlu0 %v1101_v46, %s2071_s21  ;;  %v1109_v46 = vmul.f32 %v3050_v53, %v1072_v13  ;;  %v1081_v7 = vmul.f32 %v1058_v60, %v2435_v38  ;;  %v1082_v13 = vmul.f32 %v1058_v60, %v2465_v47 }
 0x3a6   :  { %v1110_v23 = vmul.f32 %v3057_v48, %v1073_v56 }
 0x3a7   :  { %v1118_v56 = vmul.f32 %v3050_v53, %v1081_v7 }
 0x3ac   :  { %1161 = vrot.lane.b32.xlu1 %v1105_v4, %s2071_s21  ;;  %1157 = vrot.lane.b32.xlu2 %v1103_v52, %s2071_s21  ;;  %v1076_v4 = vmul.f32 %v1048_v39, %v2421_v15  ;;  %v1112_v52 = vmul.f32 %v3050_v53, %v1075_v54  ;;  %v1079_v39 = vmul.f32 %v3044_v49, %v2446_v25  ;;  %v1286_v54 = vperm.slane %v3153_v26, 5 }
 0x3ad   :  { %1159 = vrot.lane.b32.xlu0 %v1104_v9, %s2071_s21 }
 0x3ae   :  { %v1113_v9 = vmul.f32 %v3057_v48, %v1076_v4 }
 0x3b4   :  { %1167 = vrot.lane.b32.xlu1 %v1108_v5, %s2071_s21  ;;  %1163 = vrot.lane.b32.xlu2 %v1106_v17, %s2071_s21  ;;  %v1115_v5 = vmul.f32 %v3050_v53, %v1078_v29  ;;  %v1116_v17 = vmul.f32 %v3057_v48, %v1079_v39  ;;  %v3144_v53 = vld [vmem:[%s3816_s5 + $0x8] sm:$0xff]  ;;  %s2073_s5 = smov 96  }
 0x3b5   :  { %1165 = vrot.lane.b32.xlu0 %v1107_v10, %s2071_s21  ;;  %v1083_v10 = vmul.f32 %v1058_v60, %v2458_v37  ;;  %v163_v60 = vld [vmem:[%s3812_s1 + $0xc0] sm:$0xff] }
 0x3b7   :  { %v1120_v49 = vmul.f32 %v3048_v24, %v1083_v10  ;;  %v164_v24 = vld [vmem:[%s3812_s1 + $0xc8] sm:$0xff] }
 0x3bc   :  { %1173 = vrot.lane.b32.xlu1 %v1111_v59, %s2071_s21  ;;  %1169 = vrot.lane.b32.xlu2 %v1109_v46, %s2071_s21  ;;  %v1119_v59 = vmul.f32 %v3057_v48, %v1082_v13  ;;  %v165_v46 = vld [vmem:[%s3812_s1 + $0xd0] sm:$0xff]  ;;  %v1287_v48 = vperm.slane %v3144_v53, 5 }
 0x3bd   :  { %1171 = vrot.lane.b32.xlu0 %v1110_v23, %s2071_s21  ;;  %v166_v23 = vld [vmem:[%s3812_s1 + $0xd8] sm:$0xff] }
 0x3c4   :  { %1179 = vrot.lane.b32.xlu1 %v1114_v62, %s2071_s21  ;;  %1175 = vrot.lane.b32.xlu2 %v1112_v52, %s2071_s21 }
 0x3c5   :  { %1177 = vrot.lane.b32.xlu0 %v1113_v9, %s2071_s21 }
 0x3cc   :  { %1185 = vrot.lane.b32.xlu1 %v1117_v28, %s2071_s21  ;;  %1181 = vrot.lane.b32.xlu2 %v1115_v5, %s2071_s21 }
 0x3cd   :  { %1183 = vrot.lane.b32.xlu0 %v1116_v17, %s2071_s21 }
 0x3d4   :  { %1191 = vrot.lane.b32.xlu1 %v1120_v49, %s2071_s21  ;;  %1187 = vrot.lane.b32.xlu2 %v1118_v56, %s2071_s21  ;;  %v3906_v49 = vld [vmem:[#allocation7_spill] sm:$0xff] }
 0x3d5   :  { %1189 = vrot.lane.b32.xlu0 %v1119_v59, %s2071_s21  ;;  %v205_v56 = vmul.f32 %v3906_v49, %v2335_v21  ;;  %v206_v59 = vmul.f32 %v3906_v49, %v2369_v34 }
 0x3dc   :  { %1254 = vperm.xlu1 %2030, %v165_v46   ;;  %1244 = vperm.xlu2 %2031, %v163_v60  }
 0x3dd   :  { %1249 = vperm.xlu0 %2032, %v164_v24   ;;  %v3910_v24 = vld [vmem:[#allocation14_spill] sm:$0xff] }
 0x3e4   :  { %1292 = vrot.lane.b32.xlu1 %v1287_v48, %s2072_s11  ;;  %1259 = vperm.xlu2 %2031, %v166_v23   ;;  %v224_v48 = vmul.f32 %v3910_v24, %v206_v59  ;;  %v3911_v23 = vld [vmem:[#allocation15_spill] sm:$0xff] }
 0x3e5   :  { %1290 = vrot.lane.b32.xlu0 %v1286_v54, %s2072_s11  ;;  %v3912_v54 = vld [vmem:[#allocation16_spill] sm:$0xff] }
 0x3f6   :  { %v1146_v4 = vpop.permute.xlu2 %1145 }
 0x3fe   :  { %v1152_v62 = vpop.permute.xlu2 %1151 }
 0x406   :  { %v1158_v5 = vpop.permute.xlu2 %1157 }
 0x40e   :  { %v1150_v52 = vpop.permute.xlu1 %1149 }
 0x40f   :  { %v1148_v9 = vpop.permute.xlu0 %1147 }
 0x410   :  { %v1194_v16 = vsel %vm1193_vm9, %v1146_v4, %v1148_v9  ;;  %v1195_v29 = vsel %vm1193_vm9, %v1148_v9, %v1150_v52  ;;  %v429_v4 = vsel %vm422_vm2, %v3912_v54, %v3911_v23 }
 0x411   :  { %v3159_v39 = vadd.f32 %v1194_v16, %v2956_v20  ;;  %v3162_v28 = vadd.f32 %v1195_v29, %v2958_v57  ;;  %v3909_v57 = vld [vmem:[#allocation13_spill] sm:$0xff]  ;;  %v3914_v16 = vld [vmem:[#allocation10_spill] sm:$0xff] }
 0x412   :  { %v223_v60 = vmul.f32 %v3909_v57, %v205_v56  ;;  %v3917_v56 = vld [vmem:[#allocation32_spill] sm:$0xff] }
 0x413   :  { %3904 = vst [vmem:[#allocation43_spill] sm:$0xff] %v3159_v39 }
 0x414   :  { %3905 = vst [vmem:[#allocation44_spill] sm:$0xff] %v3162_v28  ;;  %v259_v29 = vadd.f32 %v3914_v16, %v223_v60  ;;  %v3920_v28 = vld [vmem:[#allocation47_spill] sm:$0xff] }
 0x416   :  { %v1156_v17 = vpop.permute.xlu1 %1155 }
 0x417   :  { %v1154_v10 = vpop.permute.xlu0 %1153 }
 0x418   :  { %v1196_v7 = vsel %vm1193_vm9, %v1152_v62, %v1154_v10  ;;  %v1197_v13 = vsel %vm1193_vm9, %v1154_v10, %v1156_v17  ;;  %v3913_v62 = vld [vmem:[#allocation18_spill] sm:$0xff]  ;;  %v1164_v17 = vpop.permute.xlu2 %1163  ;;  %v3915_v10 = vld [vmem:[#allocation29_spill] sm:$0xff] }
 0x419   :  { %v3171_v46 = vadd.f32 %v1196_v7, %v2976_v51  ;;  %v3174_v20 = vadd.f32 %v1197_v13, %v2978_v40  ;;  %v430_v52 = vsel %vm422_vm2, %v3911_v23, %v3913_v62  ;;  %v260_v51 = vadd.f32 %v3914_v16, %v224_v48  ;;  %v3916_v7 = vld [vmem:[#allocation30_spill] sm:$0xff] }
 0x41a   :  { %v631_v13 = vsel %vm624_vm5, %v3916_v7, %v3915_v10  ;;  %v632_v59 = vsel %vm624_vm5, %v3915_v10, %v3917_v56  ;;  %v461_v23 = vadd.f32 %v429_v4, %v259_v29 }
 0x41b   :  { %3907 = vst [vmem:[#allocation19_spill] sm:$0xff] %v3171_v46  ;;  %v462_v62 = vadd.f32 %v430_v52, %v260_v51  ;;  %v3919_v46 = vld [vmem:[#allocation42_spill] sm:$0xff] }
 0x41c   :  { %3908 = vst [vmem:[#allocation22_spill] sm:$0xff] %v3174_v20  ;;  %v3918_v20 = vld [vmem:[#allocation41_spill] sm:$0xff]  ;;  %v663_v56 = vadd.f32 %v631_v13, %v461_v23 }
 0x41d   :  { %v833_v7 = vsel %vm826_vm6, %v3919_v46, %v3918_v20  ;;  %v834_v10 = vsel %vm826_vm6, %v3918_v20, %v3920_v28  ;;  %v3921_v46 = vld [vmem:[#allocation5_spill] sm:$0xff] }
 0x41e   :  { %v1162_v9 = vpop.permute.xlu1 %1161  ;;  %v865_v39 = vadd.f32 %v833_v7, %v663_v56  ;;  %v209_v51 = vmul.f32 %v3921_v46, %v2389_v43  ;;  %v210_v28 = vmul.f32 %v3921_v46, %v2421_v15  ;;  %v3925_v7 = vld [vmem:[#allocation8_spill] sm:$0xff] }
 0x41f   :  { %v1160_v40 = vpop.permute.xlu0 %1159  ;;  %v212_v56 = vmul.f32 %v3925_v7, %v2446_v25 }
 0x420   :  { %v1198_v54 = vsel %vm1193_vm9, %v1158_v5, %v1160_v40  ;;  %v1199_v45 = vsel %vm1193_vm9, %v1160_v40, %v1162_v9  ;;  %v664_v5 = vadd.f32 %v632_v59, %v462_v62  ;;  %v1030_v52 = vadd.f32 %v3001_v18, %v865_v39  ;;  %v1170_v20 = vpop.permute.xlu2 %1169  ;;  %v3922_v39 = vld [vmem:[#allocation17_spill] sm:$0xff] }
 0x421   :  { %v3195_v60 = vadd.f32 %v1198_v54, %v2996_v8  ;;  %v3198_v48 = vadd.f32 %v1199_v45, %v2998_v6  ;;  %v227_v18 = vmul.f32 %v3909_v57, %v209_v51  ;;  %v3923_v59 = vld [vmem:[#allocation21_spill] sm:$0xff]  ;;  %v3924_v54 = vld [vmem:[#allocation24_spill] sm:$0xff] }
 0x422   :  { %v866_v9 = vadd.f32 %v834_v10, %v664_v5  ;;  %v434_v23 = vsel %vm422_vm2, %v3922_v39, %v3924_v54  ;;  %v211_v10 = vmul.f32 %v3925_v7, %v2410_v35  ;;  %v3926_v5 = vld [vmem:[#allocation9_spill] sm:$0xff]  ;;  %v3932_v7 = vld [vmem:[#allocation46_spill] sm:$0xff] }
 0x424   :  { %v1031_v8 = vadd.f32 %v3004_v31, %v866_v9  ;;  %v228_v31 = vmul.f32 %v3910_v24, %v210_v28  ;;  %v263_v9 = vadd.f32 %v3926_v5, %v227_v18 }
 0x426   :  { %v1168_v4 = vpop.permute.xlu1 %1167 }
 0x427   :  { %v1166_v29 = vpop.permute.xlu0 %1165 }
 0x428   :  { %v1200_v45 = vsel %vm1193_vm9, %v1164_v17, %v1166_v29  ;;  %v1201_v6 = vsel %vm1193_vm9, %v1166_v29, %v1168_v4  ;;  %v433_v17 = vsel %vm422_vm2, %v3923_v59, %v3922_v39  ;;  %v264_v4 = vadd.f32 %v3926_v5, %v228_v31  ;;  %v3928_v29 = vld [vmem:[#allocation34_spill] sm:$0xff]  ;;  %v3931_v31 = vld [vmem:[#allocation45_spill] sm:$0xff] }
 0x429   :  { %v3214_v40 = vadd.f32 %v1200_v45, %v1030_v52  ;;  %v3216_v13 = vadd.f32 %v1201_v6, %v1031_v8  ;;  %v3927_v8 = vld [vmem:[#allocation31_spill] sm:$0xff]  ;;  %v3929_v6 = vld [vmem:[#allocation37_spill] sm:$0xff]  ;;  %v465_v39 = vadd.f32 %v433_v17, %v263_v9  ;;  %v837_v5 = vsel %vm826_vm6, %v3932_v7, %v3931_v31  ;;  %v1176_v9 = vpop.permute.xlu2 %1175 }
 0x42a   :  { %v635_v45 = vsel %vm624_vm5, %v3928_v29, %v3927_v8  ;;  %v636_v46 = vsel %vm624_vm5, %v3927_v8, %v3929_v6  ;;  %v466_v59 = vadd.f32 %v434_v23, %v264_v4  ;;  %v3933_v29 = vld [vmem:[#allocation51_spill] sm:$0xff]  ;;  %v3934_v6 = vld [vmem:[#allocation20_spill] sm:$0xff] }
 0x42b   :  { %v838_v8 = vsel %vm826_vm6, %v3931_v31, %v3933_v29  ;;  %v667_v17 = vadd.f32 %v635_v45, %v465_v39  ;;  %v3936_v31 = vld [vmem:[#allocation26_spill] sm:$0xff]  ;;  %v3938_v29 = vld [vmem:[#allocation33_spill] sm:$0xff] }
 0x42c   :  { %v668_v23 = vadd.f32 %v636_v46, %v466_v59  ;;  %v3937_v45 = vld [vmem:[#allocation6_spill] sm:$0xff] }
 0x42e   :  { %v1174_v62 = vpop.permute.xlu1 %1173  ;;  %v870_v4 = vadd.f32 %v838_v8, %v668_v23 }
 0x42f   :  { %v1172_v52 = vpop.permute.xlu0 %1171 }
 0x430   :  { %v1202_v51 = vsel %vm1193_vm9, %v1170_v20, %v1172_v52  ;;  %v1203_v28 = vsel %vm1193_vm9, %v1172_v52, %v1174_v62  ;;  %v229_v20 = vmul.f32 %v3909_v57, %v211_v10  ;;  %v230_v62 = vmul.f32 %v3910_v24, %v212_v56 }
 0x431   :  { %v3241_v54 = vadd.f32 %v1202_v51, %v3022_v61  ;;  %v3244_v18 = vadd.f32 %v1203_v28, %v3024_v41  ;;  %v869_v61 = vadd.f32 %v837_v5, %v667_v17  ;;  %v213_v41 = vmul.f32 %v3906_v49, %v2435_v38  ;;  %v3935_v51 = vld [vmem:[#allocation25_spill] sm:$0xff]  ;;  %v3940_v17 = vld [vmem:[#allocation39_spill] sm:$0xff] }
 0x432   :  { %v214_v52 = vmul.f32 %v3906_v49, %v2465_v47  ;;  %v435_v28 = vsel %vm422_vm2, %v3935_v51, %v3934_v6  ;;  %v436_v10 = vsel %vm422_vm2, %v3934_v6, %v3936_v31  ;;  %v265_v46 = vadd.f32 %v3937_v45, %v229_v20  ;;  %v3939_v49 = vld [vmem:[#allocation36_spill] sm:$0xff] }
 0x433   :  { %3930 = vst [vmem:[#allocation11_spill] sm:$0xff] %v3244_v18  ;;  %v266_v39 = vadd.f32 %v3937_v45, %v230_v62  ;;  %v1034_v59 = vadd.f32 %v3027_v55, %v869_v61  ;;  %v1035_v7 = vadd.f32 %v3030_v36, %v870_v4  ;;  %v637_v8 = vsel %vm624_vm5, %v3939_v49, %v3938_v29  ;;  %v3941_v36 = vld [vmem:[#allocation49_spill] sm:$0xff]  ;;  %v3942_v61 = vld [vmem:[#allocation48_spill] sm:$0xff] }
 0x434   :  { %v638_v23 = vsel %vm624_vm5, %v3938_v29, %v3940_v17  ;;  %v467_v20 = vadd.f32 %v435_v28, %v265_v46  ;;  %v839_v4 = vsel %vm826_vm6, %v3942_v61, %v3941_v36  ;;  %v3943_v45 = vld [vmem:[#allocation53_spill] sm:$0xff]  ;;  %v1182_v46 = vpop.permute.xlu2 %1181 }
 0x435   :  { %v468_v31 = vadd.f32 %v436_v10, %v266_v39  ;;  %v840_v49 = vsel %vm826_vm6, %v3941_v36, %v3943_v45  ;;  %v3944_v39 = vld [vmem:[#allocation23_spill] sm:$0xff] }
 0x436   :  { %v1180_v56 = vpop.permute.xlu1 %1179  ;;  %v669_v18 = vadd.f32 %v637_v8, %v467_v20  ;;  %v3949_v20 = vld [vmem:[#allocation40_spill] sm:$0xff] }
 0x437   :  { %v1178_v5 = vpop.permute.xlu0 %1177  ;;  %v670_v29 = vadd.f32 %v638_v23, %v468_v31 }
 0x438   :  { %v1204_v6 = vsel %vm1193_vm9, %v1176_v9, %v1178_v5  ;;  %v1205_v51 = vsel %vm1193_vm9, %v1178_v5, %v1180_v56  ;;  %v231_v9 = vmul.f32 %v3909_v57, %v213_v41  ;;  %v232_v56 = vmul.f32 %v3910_v24, %v214_v52  ;;  %v3946_v5 = vld [vmem:[#allocation28_spill] sm:$0xff]  ;;  %v3947_v41 = vld [vmem:[#allocation35_spill] sm:$0xff]  ;;  %v3948_v52 = vld [vmem:[#allocation38_spill] sm:$0xff] }
 0x439   :  { %v3276_v62 = vadd.f32 %v1204_v6, %v1034_v59  ;;  %v3278_v55 = vadd.f32 %v1205_v51, %v1035_v7  ;;  %v871_v28 = vadd.f32 %v839_v4, %v669_v18  ;;  %v872_v10 = vadd.f32 %v840_v49, %v670_v29  ;;  %v3945_v59 = vld [vmem:[#allocation27_spill] sm:$0xff]  ;;  %v3951_v49 = vld [vmem:[#allocation50_spill] sm:$0xff] }
 0x43a   :  { %v437_v7 = vsel %vm422_vm2, %v3945_v59, %v3944_v39  ;;  %v438_v17 = vsel %vm422_vm2, %v3944_v39, %v3946_v5  ;;  %v267_v51 = vadd.f32 %v3914_v16, %v231_v9  ;;  %v268_v8 = vadd.f32 %v3914_v16, %v232_v56  ;;  %v3952_v9 = vld [vmem:[#allocation54_spill] sm:$0xff] }
 0x43b   :  { %v1036_v57 = vadd.f32 %v3033_v27, %v871_v28  ;;  %v1037_v24 = vadd.f32 %v3036_v50, %v872_v10  ;;  %v639_v23 = vsel %vm624_vm5, %v3948_v52, %v3947_v41  ;;  %v640_v31 = vsel %vm624_vm5, %v3947_v41, %v3949_v20  ;;  %v3950_v50 = vld [vmem:[#allocation52_spill] sm:$0xff] }
 0x43c   :  { %v469_v4 = vadd.f32 %v437_v7, %v267_v51  ;;  %v470_v45 = vadd.f32 %v438_v17, %v268_v8  ;;  %v841_v29 = vsel %vm826_vm6, %v3951_v49, %v3950_v50  ;;  %v842_v56 = vsel %vm826_vm6, %v3950_v50, %v3952_v9  ;;  %v1188_v17 = vpop.permute.xlu2 %1187 }
 0x43e   :  { %v1186_v6 = vpop.permute.xlu1 %1185  ;;  %v671_v28 = vadd.f32 %v639_v23, %v469_v4  ;;  %v672_v10 = vadd.f32 %v640_v31, %v470_v45 }
 0x43f   :  { %v1184_v18 = vpop.permute.xlu0 %1183 }
 0x440   :  { %v1206_v36 = vsel %vm1193_vm9, %v1182_v46, %v1184_v18  ;;  %v1207_v61 = vsel %vm1193_vm9, %v1184_v18, %v1186_v6  ;;  %v873_v39 = vadd.f32 %v841_v29, %v671_v28  ;;  %v874_v46 = vadd.f32 %v842_v56, %v672_v10 }
 0x441   :  { %v3306_v16 = vadd.f32 %v1206_v36, %v1036_v57  ;;  %v3308_v27 = vadd.f32 %v1207_v61, %v1037_v24 }
 0x442   :  { %v1038_v7 = vadd.f32 %v3039_v19, %v873_v39  ;;  %v1039_v5 = vadd.f32 %v3042_v30, %v874_v46 }
 0x444   :  { %v1245_v52 = vpop.permute.xlu2 %1244 }
 0x445   :  { %v1264_v23 = vmul.f32 %v1245_v52, %v2283_v0  ;;  %v1262_v30 = vmul.f32 %v1245_v52, %v2270_v58  ;;  %v1263_v36 = vmul.f32 %v1245_v52, %v2289_v2 }
 0x446   :  { %v1192_v59 = vpop.permute.xlu1 %1191 }
 0x447   :  { %v1190_v6 = vpop.permute.xlu0 %1189 }
 0x448   :  { %v1208_v51 = vsel %vm1193_vm9, %v1188_v17, %v1190_v6  ;;  %v1209_v8 = vsel %vm1193_vm9, %v1190_v6, %v1192_v59 }
 0x449   :  { %v3320_v57 = vadd.f32 %v1208_v51, %v1038_v7  ;;  %v3322_v24 = vadd.f32 %v1209_v8, %v1039_v5 }
 0x44c   :  { %v1260_v51 = vpop.permute.xlu2 %1259 }
 0x44d   :  { %v1273_v8 = vmul.f32 %v1260_v51, %v2358_v32 }
 0x44e   :  { %v3324_v18 = vpop.permute.xlu1 %1254 }
 0x44f   :  { %v3326_v41 = vpop.permute.xlu0 %1249  ;;  %v1281_v50 = vmul.f32 %v3324_v18, %v2446_v25  ;;  %v1270_v46 = vmul.f32 %v3324_v18, %v2339_v22  ;;  %v1268_v59 = vmul.f32 %v3324_v18, %v2311_v11  ;;  %v1269_v5 = vmul.f32 %v3324_v18, %v3903_v63 }
 0x450   :  { %v1267_v29 = vmul.f32 %v3326_v41, %v2314_v12  ;;  %v1265_v9 = vmul.f32 %v3326_v41, %v2286_v1  ;;  %v1266_v28 = vmul.f32 %v3326_v41, %v2319_v14 }
 0x456   :  { %v3329_v19 = vpop.permute.xlu1 %1292 }
 0x457   :  { %v3332_v20 = vpop.permute.xlu0 %1290  ;;  %v1301_v31 = vmul.f32 %v3329_v19, %v1264_v23  ;;  %v1304_v56 = vmul.f32 %v3329_v19, %v1267_v29  ;;  %v1307_v7 = vmul.f32 %v3329_v19, %v1270_v46  ;;  %v1271_v23 = vmul.f32 %v1260_v51, %v2335_v21 }
 0x458   :  { %v1299_v61 = vmul.f32 %v3332_v20, %v1262_v30  ;;  %v3340_v4 = vsel %vm1294_vm10, %v3332_v20, %v3329_v19  ;;  %v1302_v10 = vmul.f32 %v3332_v20, %v1265_v9  ;;  %v1305_v17 = vmul.f32 %v3332_v20, %v1268_v59 }
 0x459   :  { %1351 = vrot.lane.b32.xlu1 %v1301_v31, %s2073_s5  ;;  %v1300_v45 = vmul.f32 %v3340_v4, %v1263_v36  ;;  %v3349_v49 = vmul.f32 %v3340_v4, %v1281_v50  ;;  %v1303_v39 = vmul.f32 %v3340_v4, %v1266_v28  ;;  %v1306_v6 = vmul.f32 %v3340_v4, %v1269_v5 }
 0x45a   :  { %1347 = vrot.lane.b32.xlu2 %v1299_v61, %s2073_s5  ;;  %v1310_v30 = vmul.f32 %v3329_v19, %v1273_v8  ;;  %v1272_v31 = vmul.f32 %v1260_v51, %v2369_v34  ;;  %v1308_v36 = vmul.f32 %v3332_v20, %v1271_v23  ;;  %v1274_v50 = vmul.f32 %v1245_v52, %v2364_v33  ;;  %v174_v8 = vld [vmem:[%s3812_s1 + $0x118] sm:$0xff] }
 0x45b   :  { %1349 = vrot.lane.b32.xlu0 %v1300_v45, %s2073_s5  ;;  %v1276_v45 = vmul.f32 %v1245_v52, %v2385_v42  ;;  %v1275_v9 = vmul.f32 %v1245_v52, %v2394_v3  ;;  %v1278_v52 = vmul.f32 %v3326_v41, %v2421_v15  ;;  %v1488_v5 = vperm.slane %v3153_v26, 6 }
 0x45c   :  { %v1309_v61 = vmul.f32 %v3340_v4, %v1272_v31  ;;  %v1690_v23 = vperm.slane %v3153_v26, 7  ;;  %v168_v31 = vld [vmem:[%s3812_s1 + $0xe8] sm:$0xff]  ;;  %v1283_v26 = vmul.f32 %v1260_v51, %v2435_v38 }
 0x45d   :  { %v1313_v29 = vmul.f32 %v3329_v19, %v1276_v45  ;;  %v1312_v28 = vmul.f32 %v3340_v4, %v1275_v9  ;;  %v1315_v59 = vmul.f32 %v3340_v4, %v1278_v52  ;;  %v171_v45 = vld [vmem:[%s3812_s1 + $0x100] sm:$0xff] }
 0x461   :  { %1357 = vrot.lane.b32.xlu1 %v1304_v56, %s2073_s5  ;;  %v1311_v56 = vmul.f32 %v3332_v20, %v1274_v50  ;;  %v1280_v50 = vmul.f32 %v3324_v18, %v2410_v35 }
 0x462   :  { %1353 = vrot.lane.b32.xlu2 %v1302_v10, %s2073_s5  ;;  %v170_v10 = vld [vmem:[%s3812_s1 + $0xf8] sm:$0xff] }
 0x463   :  { %1355 = vrot.lane.b32.xlu0 %v1303_v39, %s2073_s5  ;;  %v1277_v39 = vmul.f32 %v3326_v41, %v2389_v43  ;;  %v1317_v9 = vmul.f32 %v3332_v20, %v1280_v50 }
 0x465   :  { %v1314_v46 = vmul.f32 %v3332_v20, %v1277_v39  ;;  %v1282_v39 = vmul.f32 %v3324_v18, %v2439_v44 }
 0x467   :  { %v1319_v52 = vmul.f32 %v3329_v19, %v1282_v39 }
 0x469   :  { %1363 = vrot.lane.b32.xlu1 %v1307_v7, %s2073_s5  ;;  %v169_v7 = vld [vmem:[%s3812_s1 + $0xf0] sm:$0xff] }
 0x46a   :  { %1359 = vrot.lane.b32.xlu2 %v1305_v17, %s2073_s5  ;;  %v1489_v17 = vperm.slane %v3144_v53, 6 }
 0x46b   :  { %1361 = vrot.lane.b32.xlu0 %v1306_v6, %s2073_s5  ;;  %v1691_v6 = vperm.slane %v3144_v53, 7  ;;  %v173_v53 = vld [vmem:[%s3812_s1 + $0x110] sm:$0xff] }
 0x471   :  { %1369 = vrot.lane.b32.xlu1 %v1310_v30, %s2073_s5  ;;  %v167_v30 = vld [vmem:[%s3812_s1 + $0xe0] sm:$0xff] }
 0x472   :  { %1365 = vrot.lane.b32.xlu2 %v1308_v36, %s2073_s5  ;;  %v1320_v36 = vmul.f32 %v3332_v20, %v1283_v26 }
 0x473   :  { %1367 = vrot.lane.b32.xlu0 %v1309_v61, %s2073_s5  ;;  %v172_v61 = vld [vmem:[%s3812_s1 + $0x108] sm:$0xff]  ;;  %s2076_s1 = smov 95  }
 0x479   :  { %1375 = vrot.lane.b32.xlu1 %v1313_v29, %s2073_s5  ;;  %v1284_v29 = vmul.f32 %v1260_v51, %v2465_v47 }
 0x47a   :  { %1371 = vrot.lane.b32.xlu2 %v1311_v56, %s2073_s5  ;;  %v1285_v56 = vmul.f32 %v1260_v51, %v2458_v37 }
 0x47b   :  { %1373 = vrot.lane.b32.xlu0 %v1312_v28, %s2073_s5  ;;  %v1321_v28 = vmul.f32 %v3340_v4, %v1284_v29 }
 0x481   :  { %1461 = vperm.xlu1 %2030, %v170_v10   ;;  %v1322_v10 = vmul.f32 %v3329_v19, %v1285_v56 }
 0x482   :  { %1377 = vrot.lane.b32.xlu2 %v1314_v46, %s2073_s5 }
 0x483   :  { %1379 = vrot.lane.b32.xlu0 %v1315_v59, %s2073_s5 }
 0x489   :  { %1456 = vperm.xlu1 %2030, %v169_v7  }
 0x48a   :  { %1492 = vrot.lane.b32.xlu2 %v1488_v5, %s2074_s16 }
 0x48b   :  { %1494 = vrot.lane.b32.xlu0 %v1489_v17, %s2074_s16  ;;  %s2079_s16 = smov 256  }
 0x491   :  { %1696 = vrot.lane.b32.xlu1 %v1691_v6, %s2075_s27  ;;  %v3953_v6 = vld [vmem:[#allocation43_spill] sm:$0xff] }
 0x492   :  { %1663 = vperm.xlu2 %2031, %v174_v8   ;;  %v3954_v8 = vld [vmem:[#allocation44_spill] sm:$0xff] }
 0x493   :  { %1694 = vrot.lane.b32.xlu0 %v1690_v23, %s2075_s27 }
 0x499   :  { %1446 = vperm.xlu1 %2030, %v167_v30  }
 0x49a   :  { %1451 = vperm.xlu2 %2031, %v168_v31  }
 0x49b   :  { %1658 = vperm.xlu0 %2032, %v173_v53  }
 0x4a1   :  { %1389 = vrot.lane.b32.xlu1 %v1320_v36, %s2073_s5  ;;  %v3955_v36 = vld [vmem:[#allocation19_spill] sm:$0xff] }
 0x4a2   :  { %1653 = vperm.xlu2 %2031, %v172_v61  }
 0x4a3   :  { %1648 = vperm.xlu0 %2032, %v171_v45   ;;  %v3956_v45 = vld [vmem:[#allocation22_spill] sm:$0xff] }
 0x4a9   :  { %1383 = vrot.lane.b32.xlu1 %v1317_v9, %s2073_s5 }
 0x4aa   :  { %1391 = vrot.lane.b32.xlu2 %v1321_v28, %s2073_s5 }
 0x4ab   :  { %1393 = vrot.lane.b32.xlu0 %v1322_v10, %s2073_s5 }
 0x4b2   :  { %1385 = vrot.lane.b32.xlu2 %v3349_v49, %s2073_s5 }
 0x4b3   :  { %1387 = vrot.lane.b32.xlu0 %v1319_v52, %s2073_s5 }
 0x4b4   :  { %v1348_v20 = vpop.permute.xlu2 %1347 }
 0x4bc   :  { %v1354_v4 = vpop.permute.xlu2 %1353 }
 0x4c4   :  { %v1360_v51 = vpop.permute.xlu2 %1359 }
 0x4cb   :  { %v1352_v46 = vpop.permute.xlu1 %1351 }
 0x4cc   :  { %v1366_v59 = vpop.permute.xlu2 %1365 }
 0x4cd   :  { %v1350_v7 = vpop.permute.xlu0 %1349 }
 0x4ce   :  { %v1396_v5 = vsel %vm1395_vm11, %v1348_v20, %v1350_v7  ;;  %v1397_v17 = vsel %vm1395_vm11, %v1350_v7, %v1352_v46 }
 0x4cf   :  { %v3451_v18 = vadd.f32 %v1396_v5, %v3953_v6  ;;  %v3454_v23 = vadd.f32 %v1397_v17, %v3954_v8 }
 0x4d3   :  { %v1358_v49 = vpop.permute.xlu1 %1357 }
 0x4d4   :  { %v1372_v30 = vpop.permute.xlu2 %1371 }
 0x4d5   :  { %v1356_v31 = vpop.permute.xlu0 %1355 }
 0x4d6   :  { %v1398_v53 = vsel %vm1395_vm11, %v1354_v4, %v1356_v31  ;;  %v1399_v26 = vsel %vm1395_vm11, %v1356_v31, %v1358_v49 }
 0x4d7   :  { %v3459_v61 = vadd.f32 %v1398_v53, %v3955_v36  ;;  %v3462_v50 = vadd.f32 %v1399_v26, %v3956_v45 }
 0x4db   :  { %v1364_v29 = vpop.permute.xlu1 %1363 }
 0x4dc   :  { %v1378_v9 = vpop.permute.xlu2 %1377 }
 0x4dd   :  { %v1362_v56 = vpop.permute.xlu0 %1361 }
 0x4de   :  { %v1400_v28 = vsel %vm1395_vm11, %v1360_v51, %v1362_v56  ;;  %v1401_v10 = vsel %vm1395_vm11, %v1362_v56, %v1364_v29 }
 0x4df   :  { %v3467_v39 = vadd.f32 %v1400_v28, %v3195_v60  ;;  %v3470_v52 = vadd.f32 %v1401_v10, %v3198_v48  ;;  %v3958_v10 = vld [vmem:[#allocation12_spill] sm:$0xff] }
 0x4e3   :  { %v1370_v20 = vpop.permute.xlu1 %1369 }
 0x4e4   :  { %v3472_v4 = vpop.permute.xlu2 %1492 }
 0x4e5   :  { %v1368_v46 = vpop.permute.xlu0 %1367 }
 0x4e6   :  { %v1402_v7 = vsel %vm1395_vm11, %v1366_v59, %v1368_v46  ;;  %v1403_v5 = vsel %vm1395_vm11, %v1368_v46, %v1370_v20  ;;  %v3957_v59 = vld [vmem:[#allocation11_spill] sm:$0xff] }
 0x4e7   :  { %v3477_v17 = vadd.f32 %v1402_v7, %v3214_v40  ;;  %v3480_v51 = vadd.f32 %v1403_v5, %v3216_v13 }
 0x4eb   :  { %v1376_v6 = vpop.permute.xlu1 %1375 }
 0x4ec   :  { %v3482_v60 = vpop.permute.xlu2 %1663 }
 0x4ed   :  { %v1374_v8 = vpop.permute.xlu0 %1373 }
 0x4ee   :  { %v1404_v48 = vsel %vm1395_vm11, %v1372_v30, %v1374_v8  ;;  %v1405_v49 = vsel %vm1395_vm11, %v1374_v8, %v1376_v6 }
 0x4ef   :  { %v3487_v31 = vadd.f32 %v1404_v48, %v3241_v54  ;;  %v3490_v53 = vadd.f32 %v1405_v49, %v3957_v59 }
 0x4f3   :  { %v3492_v26 = vpop.permute.xlu1 %1461 }
 0x4f4   :  { %v1452_v40 = vpop.permute.xlu2 %1451  ;;  %v1485_v13 = vmul.f32 %v3492_v26, %v2435_v38  ;;  %v1487_v28 = vmul.f32 %v3492_v26, %v2458_v37 }
 0x4f5   :  { %v3496_v36 = vpop.permute.xlu0 %1379  ;;  %v1467_v54 = vmul.f32 %v1452_v40, %v2286_v1  ;;  %v1469_v48 = vmul.f32 %v1452_v40, %v2314_v12 }
 0x4f6   :  { %v1406_v45 = vsel %vm1395_vm11, %v1378_v9, %v3496_v36  ;;  %v1522_v30 = vmul.f32 %v3472_v4, %v1485_v13  ;;  %v1279_v9 = vmul.f32 %v3326_v41, %v3958_v10  ;;  %v1468_v41 = vmul.f32 %v1452_v40, %v2319_v14 }
 0x4f7   :  { %v3502_v29 = vadd.f32 %v1406_v45, %v3276_v62  ;;  %v3507_v56 = vmul.f32 %v3472_v4, %v1467_v54  ;;  %v1486_v62 = vmul.f32 %v3492_v26, %v2465_v47 }
 0x4f8   :  { %1591 = vrot.lane.b32.xlu1 %v1522_v30, %s2076_s1  ;;  %v1316_v7 = vmul.f32 %v3329_v19, %v1279_v9 }
 0x4fb   :  { %v3523_v6 = vpop.permute.xlu1 %1456 }
 0x4fc   :  { %v1484_v59 = vmul.f32 %v3523_v6, %v2439_v44  ;;  %v1483_v13 = vmul.f32 %v3523_v6, %v2446_v25  ;;  %v1482_v45 = vmul.f32 %v3523_v6, %v2410_v35 }
 0x4fd   :  { %v3513_v20 = vpop.permute.xlu0 %1494 }
 0x4fe   :  { %v1524_v46 = vmul.f32 %v3513_v20, %v1487_v28  ;;  %v3521_v5 = vsel %vm1496_vm12, %v3472_v4, %v3513_v20  ;;  %v3532_v19 = vmul.f32 %v3513_v20, %v1469_v48  ;;  %v1521_v54 = vmul.f32 %v3513_v20, %v1484_v59 }
 0x4ff   :  { %v1523_v8 = vmul.f32 %v3521_v5, %v1486_v62  ;;  %v3535_v49 = vmul.f32 %v3521_v5, %v1468_v41  ;;  %v1520_v28 = vmul.f32 %v3521_v5, %v1483_v13  ;;  %v1519_v9 = vmul.f32 %v3472_v4, %v1482_v45 }
 0x500   :  { %1595 = vrot.lane.b32.xlu0 %v1524_v46, %s2076_s1  ;;  %1381 = vrot.lane.b32.xlu1 %v1316_v7, %s2073_s5  ;;  %v1689_v7 = vmul.f32 %v3482_v60, %v2458_v37  ;;  %v1687_v41 = vmul.f32 %v3482_v60, %v2435_v38 }
 0x501   :  { %1593 = vrot.lane.b32.xlu2 %v1523_v8, %s2076_s1  ;;  %v1688_v8 = vmul.f32 %v3482_v60, %v2465_v47 }
 0x503   :  { %v3551_v62 = vpop.permute.xlu1 %1696 }
 0x504   :  { %v1726_v59 = vmul.f32 %v3551_v62, %v1689_v7 }
 0x505   :  { %v3543_v30 = vpop.permute.xlu0 %1694 }
 0x506   :  { %v3555_v46 = vsel %vm1698_vm13, %v3543_v30, %v3551_v62  ;;  %v1724_v45 = vmul.f32 %v3543_v30, %v1687_v41  ;;  %v1480_v41 = vmul.f32 %v1452_v40, %v2421_v15 }
 0x507   :  { %v1725_v13 = vmul.f32 %v3555_v46, %v1688_v8  ;;  %v1481_v8 = vmul.f32 %v1452_v40, %v3958_v10 }
 0x508   :  { %1589 = vrot.lane.b32.xlu1 %v1521_v54, %s2076_s1  ;;  %1587 = vrot.lane.b32.xlu0 %v1520_v28, %s2076_s1 }
 0x509   :  { %1585 = vrot.lane.b32.xlu2 %v1519_v9, %s2076_s1  ;;  %v1479_v9 = vmul.f32 %v1452_v40, %v2389_v43 }
 0x50d   :  { %v1659_v48 = vpop.permute.xlu0 %1658 }
 0x50e   :  { %v1674_v54 = vmul.f32 %v1659_v48, %v2339_v22  ;;  %v1673_v28 = vmul.f32 %v1659_v48, %v3903_v63  ;;  %v1672_v47 = vmul.f32 %v1659_v48, %v2311_v11 }
 0x510   :  { %1797 = vrot.lane.b32.xlu1 %v1726_v59, %s2077_s29  ;;  %1795 = vrot.lane.b32.xlu0 %v1725_v13, %s2077_s29  ;;  %v3572_v37 = vmul.f32 %v3551_v62, %v1674_v54  ;;  %v3575_v38 = vmul.f32 %v3555_v46, %v1673_v28  ;;  %v3580_v7 = vmul.f32 %v3543_v30, %v1672_v47 }
 0x511   :  { %1793 = vrot.lane.b32.xlu2 %v1724_v45, %s2077_s29  ;;  %v1518_v59 = vmul.f32 %v3513_v20, %v1481_v8  ;;  %v1517_v13 = vmul.f32 %v3521_v5, %v1480_v41  ;;  %v1516_v45 = vmul.f32 %v3472_v4, %v1479_v9  ;;  %v1686_v54 = vmul.f32 %v1659_v48, %v2439_v44 }
 0x512   :  { %v1685_v28 = vmul.f32 %v1659_v48, %v2446_v25  ;;  %v1684_v47 = vmul.f32 %v1659_v48, %v2410_v35  ;;  %v1473_v9 = vmul.f32 %v3492_v26, %v2335_v21  ;;  %v1475_v44 = vmul.f32 %v3492_v26, %v2358_v32 }
 0x513   :  { %v1723_v40 = vmul.f32 %v3551_v62, %v1686_v54  ;;  %v1474_v35 = vmul.f32 %v3492_v26, %v2369_v34 }
 0x514   :  { %v1722_v8 = vmul.f32 %v3555_v46, %v1685_v28  ;;  %v1721_v41 = vmul.f32 %v3543_v30, %v1684_v47  ;;  %v1512_v25 = vmul.f32 %v3513_v20, %v1475_v44 }
 0x515   :  { %v1511_v48 = vmul.f32 %v3521_v5, %v1474_v35 }
 0x518   :  { %1583 = vrot.lane.b32.xlu1 %v1518_v59, %s2076_s1  ;;  %1581 = vrot.lane.b32.xlu0 %v1517_v13, %s2076_s1  ;;  %v3607_v59 = vpop.permute.xlu1 %1446  ;;  %v1510_v13 = vmul.f32 %v3472_v4, %v1473_v9 }
 0x519   :  { %1579 = vrot.lane.b32.xlu2 %v1516_v45, %s2076_s1  ;;  %v1478_v45 = vmul.f32 %v3607_v59, %v2385_v42  ;;  %v1477_v26 = vmul.f32 %v3607_v59, %v2394_v3  ;;  %v1476_v54 = vmul.f32 %v3607_v59, %v2364_v33 }
 0x51b   :  { %v1515_v28 = vmul.f32 %v3513_v20, %v1478_v45  ;;  %v1514_v47 = vmul.f32 %v3521_v5, %v1477_v26 }
 0x520   :  { %1791 = vrot.lane.b32.xlu1 %v1723_v40, %s2077_s29  ;;  %1789 = vrot.lane.b32.xlu0 %v1722_v8, %s2077_s29  ;;  %v1513_v40 = vmul.f32 %v3472_v4, %v1476_v54  ;;  %v3624_v8 = vpop.permute.xlu2 %1653 }
 0x521   :  { %1787 = vrot.lane.b32.xlu2 %v1721_v41, %s2077_s29  ;;  %v1683_v41 = vmul.f32 %v3624_v8, %v3958_v10  ;;  %v1682_v9 = vmul.f32 %v3624_v8, %v2421_v15  ;;  %v1681_v44 = vmul.f32 %v3624_v8, %v2389_v43  ;;  %v1472_v10 = vmul.f32 %v3523_v6, %v2339_v22 }
 0x522   :  { %v1471_v15 = vmul.f32 %v3523_v6, %v3903_v63  ;;  %v1470_v43 = vmul.f32 %v3523_v6, %v2311_v11  ;;  %v1677_v22 = vmul.f32 %v3482_v60, %v2358_v32  ;;  %v1676_v63 = vmul.f32 %v3482_v60, %v2369_v34 }
 0x523   :  { %v1720_v35 = vmul.f32 %v3551_v62, %v1683_v41  ;;  %v1675_v11 = vmul.f32 %v3482_v60, %v2335_v21 }
 0x524   :  { %v1508_v45 = vmul.f32 %v3521_v5, %v1471_v15  ;;  %v1507_v26 = vmul.f32 %v3472_v4, %v1470_v43  ;;  %v1714_v6 = vmul.f32 %v3551_v62, %v1677_v22  ;;  %v1713_v54 = vmul.f32 %v3555_v46, %v1676_v63 }
 0x525   :  { %v1671_v43 = vmul.f32 %v3624_v8, %v2314_v12 }
 0x528   :  { %1571 = vrot.lane.b32.xlu1 %v1512_v25, %s2076_s1  ;;  %1569 = vrot.lane.b32.xlu0 %v1511_v48, %s2076_s1  ;;  %v1719_v25 = vmul.f32 %v3555_v46, %v1682_v9  ;;  %v1718_v48 = vmul.f32 %v3543_v30, %v1681_v44 }
 0x529   :  { %1567 = vrot.lane.b32.xlu2 %v1510_v13, %s2076_s1  ;;  %v1509_v13 = vmul.f32 %v3513_v20, %v1472_v10 }
 0x530   :  { %1577 = vrot.lane.b32.xlu1 %v1515_v28, %s2076_s1  ;;  %1575 = vrot.lane.b32.xlu0 %v1514_v47, %s2076_s1  ;;  %v1649_v28 = vpop.permute.xlu0 %1648  ;;  %v1712_v47 = vmul.f32 %v3543_v30, %v1675_v11 }
 0x531   :  { %1573 = vrot.lane.b32.xlu2 %v1513_v40, %s2076_s1  ;;  %v1392_v40 = vpop.permute.xlu2 %1391  ;;  %v1680_v32 = vmul.f32 %v1649_v28, %v2385_v42  ;;  %v1679_v34 = vmul.f32 %v1649_v28, %v2394_v3  ;;  %v1678_v21 = vmul.f32 %v1649_v28, %v2364_v33 }
 0x533   :  { %v1717_v60 = vmul.f32 %v3551_v62, %v1680_v32  ;;  %v1716_v41 = vmul.f32 %v3555_v46, %v1679_v34  ;;  %v1715_v9 = vmul.f32 %v3543_v30, %v1678_v21 }
 0x538   :  { %1785 = vrot.lane.b32.xlu1 %v1720_v35, %s2077_s29  ;;  %1783 = vrot.lane.b32.xlu0 %v1719_v25, %s2077_s29  ;;  %v1390_v35 = vpop.permute.xlu1 %1389  ;;  %v1394_v42 = vpop.permute.xlu0 %1393  ;;  %v1464_v25 = vmul.f32 %v3607_v59, %v2270_v58 }
 0x539   :  { %1781 = vrot.lane.b32.xlu2 %v1718_v48, %s2077_s29  ;;  %v3672_v44 = vpop.permute.xlu2 %1385 }
 0x53a   :  { %v1501_v48 = vmul.f32 %v3472_v4, %v1464_v25  ;;  %v1708_v4 = vmul.f32 %v3551_v62, %v1671_v43 }
 0x540   :  { %1565 = vrot.lane.b32.xlu1 %v1509_v13, %s2076_s1  ;;  %1563 = vrot.lane.b32.xlu0 %v1508_v45, %s2076_s1  ;;  %v3686_v3 = vpop.permute.xlu1 %1383 }
 0x541   :  { %1561 = vrot.lane.b32.xlu2 %v1507_v26, %s2076_s1  ;;  %v1667_v26 = vmul.f32 %v1649_v28, %v2289_v2  ;;  %v1408_v25 = vsel %vm1395_vm11, %v3686_v3, %v3672_v44 }
 0x543   :  { %v1704_v63 = vmul.f32 %v3555_v46, %v1667_v26 }
 0x548   :  { %1773 = vrot.lane.b32.xlu1 %v1714_v6, %s2077_s29  ;;  %1771 = vrot.lane.b32.xlu0 %v1713_v54, %s2077_s29 }
 0x549   :  { %1769 = vrot.lane.b32.xlu2 %v1712_v47, %s2077_s29 }
 0x550   :  { %1779 = vrot.lane.b32.xlu1 %v1717_v60, %s2077_s29  ;;  %1777 = vrot.lane.b32.xlu0 %v1716_v41, %s2077_s29 }
 0x551   :  { %1775 = vrot.lane.b32.xlu2 %v1715_v9, %s2077_s29 }
 0x558   :  { %1559 = vrot.lane.b32.xlu1 %v3532_v19, %s2076_s1  ;;  %1557 = vrot.lane.b32.xlu0 %v3535_v49, %s2076_s1  ;;  %v1466_v19 = vmul.f32 %v3607_v59, %v2283_v0  ;;  %v1465_v49 = vmul.f32 %v3607_v59, %v2289_v2  ;;  %v1670_v59 = vmul.f32 %v3624_v8, %v2319_v14 }
 0x559   :  { %1555 = vrot.lane.b32.xlu2 %v3507_v56, %s2076_s1  ;;  %v1668_v14 = vmul.f32 %v1649_v28, %v2283_v0  ;;  %v1410_v2 = vsel %vm1395_vm11, %v1390_v35, %v1392_v40 }
 0x55a   :  { %v1442_v47 = vadd.f32 %v1410_v2, %v3320_v57 }
 0x55b   :  { %v1594_v33 = vpop.permute.xlu2 %1593  ;;  %v1705_v22 = vmul.f32 %v3551_v62, %v1668_v14  ;;  %v1867_v62 = vld [vmem:[%s3815_s4 + $0x8] sm:$0xff] }
 0x560   :  { %1767 = vrot.lane.b32.xlu1 %v3572_v37, %s2077_s29  ;;  %1765 = vrot.lane.b32.xlu0 %v3575_v38, %s2077_s29  ;;  %v1503_v37 = vmul.f32 %v3513_v20, %v1466_v19  ;;  %v1502_v38 = vmul.f32 %v3521_v5, %v1465_v49  ;;  %v1669_v20 = vmul.f32 %v3624_v8, %v2286_v1 }
 0x561   :  { %1763 = vrot.lane.b32.xlu2 %v3580_v7, %s2077_s29  ;;  %v1388_v7 = vpop.permute.xlu0 %1387  ;;  %v1707_v5 = vmul.f32 %v3555_v46, %v1670_v59  ;;  %v1666_v8 = vmul.f32 %v1649_v28, %v2270_v58  ;;  %v1411_v58 = vsel %vm1395_vm11, %v1392_v40, %v1394_v42 }
 0x562   :  { %v1706_v13 = vmul.f32 %v3543_v30, %v1669_v20  ;;  %v1443_v32 = vadd.f32 %v1411_v58, %v3322_v24 }
 0x563   :  { %v3692_v56 = vpop.permute.xlu2 %1585  ;;  %v1703_v11 = vmul.f32 %v3543_v30, %v1666_v8  ;;  %v1866_v30 = vld [vmem:[%s3815_s4] sm:$0xff] }
 0x568   :  { %1553 = vrot.lane.b32.xlu1 %v1503_v37, %s2076_s1  ;;  %1551 = vrot.lane.b32.xlu0 %v1502_v38, %s2076_s1  ;;  %v1409_v37 = vsel %vm1395_vm11, %v3672_v44, %v1388_v7 }
 0x569   :  { %1549 = vrot.lane.b32.xlu2 %v1501_v48, %s2076_s1  ;;  %v1441_v43 = vadd.f32 %v1409_v37, %v3308_v27 }
 0x56a   :  { %v1592_v10 = vpop.permute.xlu1 %1591 }
 0x56b   :  { %v1794_v15 = vpop.permute.xlu2 %1793  ;;  %v1612_v46 = vsel %vm1597_vm14, %v1592_v10, %v1594_v33 }
 0x56c   :  { %v1644_v21 = vadd.f32 %v1612_v46, %v1442_v47 }
 0x570   :  { %1761 = vrot.lane.b32.xlu1 %v1708_v4, %s2077_s29  ;;  %1759 = vrot.lane.b32.xlu0 %v1707_v5, %s2077_s29 }
 0x571   :  { %1757 = vrot.lane.b32.xlu2 %v1706_v13, %s2077_s29 }
 0x572   :  { %v1596_v45 = vpop.permute.xlu0 %1595  ;;  %v3714_v12 = vpop.permute.xlu1 %1381 }
 0x573   :  { %v3718_v1 = vpop.permute.xlu2 %1579  ;;  %v1613_v28 = vsel %vm1597_vm14, %v1594_v33, %v1596_v45 }
 0x574   :  { %v1645_v60 = vadd.f32 %v1613_v28, %v1443_v32 }
 0x578   :  { %1755 = vrot.lane.b32.xlu1 %v1705_v22, %s2077_s29  ;;  %1753 = vrot.lane.b32.xlu0 %v1704_v63, %s2077_s29  ;;  %v1407_v63 = vsel %vm1395_vm11, %v3496_v36, %v3714_v12 }
 0x579   :  { %1751 = vrot.lane.b32.xlu2 %v1703_v11, %s2077_s29 }
 0x57a   :  { %v1590_v6 = vpop.permute.xlu1 %1589  ;;  %v1588_v0 = vpop.permute.xlu0 %1587 }
 0x57b   :  { %v1788_v54 = vpop.permute.xlu2 %1787  ;;  %v1610_v38 = vsel %vm1597_vm14, %v3692_v56, %v1588_v0  ;;  %v1611_v48 = vsel %vm1597_vm14, %v1588_v0, %v1590_v6  ;;  %v1439_v0 = vadd.f32 %v1407_v63, %v3278_v55 }
 0x57c   :  { %v1643_v20 = vadd.f32 %v1611_v48, %v1441_v43 }
 0x580   :  { %1875 = vperm.xlu0 %2032, %v1867_v62  }
 0x581   :  { %1870 = vperm.xlu2 %2031, %v1866_v30  }
 0x582   :  { %v1798_v40 = vpop.permute.xlu1 %1797  ;;  %v1796_v34 = vpop.permute.xlu0 %1795 }
 0x583   :  { %v1814_v41 = vsel %vm1799_vm15, %v1794_v15, %v1796_v34  ;;  %v1815_v9 = vsel %vm1799_vm15, %v1796_v34, %v1798_v40  ;;  %v1568_v19 = vpop.permute.xlu2 %1567  ;;  %v1440_v15 = vadd.f32 %v1408_v25, %v3306_v16 }
 0x584   :  { %v1846_v35 = vadd.f32 %v1814_v41, %v1644_v21  ;;  %v1847_v42 = vadd.f32 %v1815_v9, %v1645_v60 }
 0x585   :  { %v1642_v59 = vadd.f32 %v1610_v38, %v1440_v15 }
 0x586   :  { %v1862_v49 = vmax.f32 %v1846_v35, 0.0  ;;  %v1863_v33 = vmax.f32 %v1847_v42, 0.0 }
 0x588   :  { %1942 = vmatpush.msra.mxu2 %v1862_v49  ;;  %1965 = vmatpush.msra.mxu3 %v1863_v33 }
 0x58a   :  { %v1584_v57 = vpop.permute.xlu1 %1583  ;;  %v1582_v24 = vpop.permute.xlu0 %1581 }
 0x58b   :  { %v1574_v10 = vpop.permute.xlu2 %1573  ;;  %v1608_v11 = vsel %vm1597_vm14, %v3718_v1, %v1582_v24  ;;  %v1609_v6 = vsel %vm1597_vm14, %v1582_v24, %v1584_v57 }
 0x58c   :  { %v1641_v2 = vadd.f32 %v1609_v6, %v1439_v0 }
 0x592   :  { %v1792_v4 = vpop.permute.xlu1 %1791  ;;  %v1790_v5 = vpop.permute.xlu0 %1789 }
 0x593   :  { %v1812_v13 = vsel %vm1799_vm15, %v1788_v54, %v1790_v5  ;;  %v1813_v3 = vsel %vm1799_vm15, %v1790_v5, %v1792_v4  ;;  %v1782_v56 = vpop.permute.xlu2 %1781  ;;  %v1640_v54 = vadd.f32 %v1608_v11, %v3502_v29 }
 0x594   :  { %v1844_v45 = vadd.f32 %v1812_v13, %v1642_v59  ;;  %v1845_v44 = vadd.f32 %v1813_v3, %v1643_v20  ;;  %v1865_v3 = vld [vmem:[%s3814_s3 + $0x8] sm:$0xff] }
 0x596   :  { %v1860_v7 = vmax.f32 %v1844_v45, 0.0  ;;  %v1861_v14 = vmax.f32 %v1845_v44, 0.0 }
 0x598   :  { %1943 = vmatpush.msra.mxu2 %v1860_v7  ;;  %1966 = vmatpush.msra.mxu3 %v1861_v14 }
 0x59a   :  { %v1572_v26 = vpop.permute.xlu1 %1571  ;;  %v1570_v8 = vpop.permute.xlu0 %1569 }
 0x59b   :  { %v1562_v27 = vpop.permute.xlu2 %1561  ;;  %v1604_v55 = vsel %vm1597_vm14, %v1568_v19, %v1570_v8  ;;  %v1605_v29 = vsel %vm1597_vm14, %v1570_v8, %v1572_v26 }
 0x59c   :  { %v1636_v41 = vadd.f32 %v1604_v55, %v3477_v17  ;;  %v1637_v9 = vadd.f32 %v1605_v29, %v3480_v51 }
 0x5a2   :  { %v1578_v16 = vpop.permute.xlu1 %1577  ;;  %v1576_v22 = vpop.permute.xlu0 %1575 }
 0x5a3   :  { %v1770_v32 = vpop.permute.xlu2 %1769  ;;  %v1606_v25 = vsel %vm1597_vm14, %v1574_v10, %v1576_v22  ;;  %v1607_v19 = vsel %vm1597_vm14, %v1576_v22, %v1578_v16  ;;  %v1864_v10 = vld [vmem:[%s3814_s3] sm:$0xff] }
 0x5a4   :  { %v1638_v38 = vadd.f32 %v1606_v25, %v3487_v31  ;;  %v1639_v17 = vadd.f32 %v1607_v19, %v3490_v53 }
 0x5aa   :  { %v1786_v58 = vpop.permute.xlu1 %1785  ;;  %v1784_v62 = vpop.permute.xlu0 %1783 }
 0x5ab   :  { %v1810_v30 = vsel %vm1799_vm15, %v1782_v56, %v1784_v62  ;;  %v1811_v46 = vsel %vm1799_vm15, %v1784_v62, %v1786_v58  ;;  %v1776_v34 = vpop.permute.xlu2 %1775 }
 0x5ac   :  { %v1842_v28 = vadd.f32 %v1810_v30, %v1640_v54  ;;  %v1843_v47 = vadd.f32 %v1811_v46, %v1641_v2 }
 0x5ae   :  { %v1858_v36 = vmax.f32 %v1842_v28, 0.0  ;;  %v1859_v12 = vmax.f32 %v1843_v47, 0.0 }
 0x5b0   :  { %1944 = vmatpush.msra.mxu2 %v1858_v36  ;;  %1967 = vmatpush.msra.mxu3 %v1859_v12 }
 0x5b2   :  { %v1566_v1 = vpop.permute.xlu1 %1565  ;;  %v1564_v40 = vpop.permute.xlu0 %1563 }
 0x5b3   :  { %v1556_v37 = vpop.permute.xlu2 %1555  ;;  %v1602_v45 = vsel %vm1597_vm14, %v1562_v27, %v1564_v40  ;;  %v1603_v44 = vsel %vm1597_vm14, %v1564_v40, %v1566_v1 }
 0x5b4   :  { %v1634_v7 = vadd.f32 %v1602_v45, %v3467_v39  ;;  %v1635_v14 = vadd.f32 %v1603_v44, %v3470_v52 }
 0x5ba   :  { %v1774_v21 = vpop.permute.xlu1 %1773  ;;  %v1772_v60 = vpop.permute.xlu0 %1771 }
 0x5bb   :  { %v1806_v35 = vsel %vm1799_vm15, %v1770_v32, %v1772_v60  ;;  %v1807_v42 = vsel %vm1799_vm15, %v1772_v60, %v1774_v21  ;;  %v1764_v13 = vpop.permute.xlu2 %1763 }
 0x5bc   :  { %v1838_v49 = vadd.f32 %v1806_v35, %v1636_v41  ;;  %v1839_v33 = vadd.f32 %v1807_v42, %v1637_v9 }
 0x5be   :  { %v1854_v57 = vmax.f32 %v1838_v49, 0.0  ;;  %v1855_v24 = vmax.f32 %v1839_v33, 0.0 }
 0x5c0   :  { %1896 = vmatpush.msra.mxu0 %v1854_v57  ;;  %1919 = vmatpush.msra.mxu1 %v1855_v24 }
 0x5c2   :  { %v1780_v51 = vpop.permute.xlu1 %1779  ;;  %v1778_v48 = vpop.permute.xlu0 %1777 }
 0x5c3   :  { %v1808_v15 = vsel %vm1799_vm15, %v1776_v34, %v1778_v48  ;;  %v1809_v43 = vsel %vm1799_vm15, %v1778_v48, %v1780_v51  ;;  %v1550_v11 = vpop.permute.xlu2 %1549 }
 0x5c4   :  { %v1840_v59 = vadd.f32 %v1808_v15, %v1638_v38  ;;  %v1841_v20 = vadd.f32 %v1809_v43, %v1639_v17 }
 0x5c6   :  { %v1856_v4 = vmax.f32 %v1840_v59, 0.0  ;;  %v1857_v5 = vmax.f32 %v1841_v20, 0.0 }
 0x5c8   :  { %1945 = vmatpush.msra.mxu2 %v1856_v4  ;;  %1968 = vmatpush.msra.mxu3 %v1857_v5 }
 0x5c9   :  { %2007 = vmatmul.msk.f32.vlgmr.msra.gmra.mxu2 %vm1294_vm10, %v1864_v10  ;;  %2009 = vmatmul.msk.f32.vlgmr.msra.gmra.mxu3 %vm1294_vm10, %v1864_v10 }
 0x5ca   :  { %v1560_v31 = vpop.permute.xlu1 %1559  ;;  %v1558_v53 = vpop.permute.xlu0 %1557 }
 0x5cb   :  { %v1600_v2 = vsel %vm1597_vm14, %v1556_v37, %v1558_v53  ;;  %v1601_v39 = vsel %vm1597_vm14, %v1558_v53, %v1560_v31  ;;  %v1758_v52 = vpop.permute.xlu2 %1757 }
 0x5cc   :  { %v1632_v58 = vadd.f32 %v1600_v2, %v3459_v61  ;;  %v1633_v62 = vadd.f32 %v1601_v39, %v3462_v50 }
 0x5d1   :  { %2008 = vmatmul.msk.f32.gmra.mxu2 %vm1294_vm10, %v1865_v3  ;;  %2010 = vmatmul.msk.f32.gmra.mxu3 %vm1294_vm10, %v1865_v3 }
 0x5d2   :  { %v1768_v56 = vpop.permute.xlu1 %1767  ;;  %v1766_v26 = vpop.permute.xlu0 %1765 }
 0x5d3   :  { %v1804_v8 = vsel %vm1799_vm15, %v1764_v13, %v1766_v26  ;;  %v1805_v16 = vsel %vm1799_vm15, %v1766_v26, %v1768_v56  ;;  %v1752_v29 = vpop.permute.xlu2 %1751 }
 0x5d4   :  { %v1836_v22 = vadd.f32 %v1804_v8, %v1634_v7  ;;  %v1837_v63 = vadd.f32 %v1805_v16, %v1635_v14 }
 0x5d6   :  { %v1852_v27 = vmax.f32 %v1836_v22, 0.0  ;;  %v1853_v6 = vmax.f32 %v1837_v63, 0.0 }
 0x5d8   :  { %1897 = vmatpush.msra.mxu0 %v1852_v27  ;;  %1920 = vmatpush.msra.mxu1 %v1853_v6 }
 0x5da   :  { %v1554_v0 = vpop.permute.xlu1 %1553  ;;  %v1552_v54 = vpop.permute.xlu0 %1551 }
 0x5db   :  { %v1598_v40 = vsel %vm1597_vm14, %v1550_v11, %v1552_v54  ;;  %v1599_v55 = vsel %vm1597_vm14, %v1552_v54, %v1554_v0 }
 0x5dc   :  { %v1630_v61 = vadd.f32 %v1598_v40, %v3451_v18  ;;  %v1631_v50 = vadd.f32 %v1599_v55, %v3454_v23  ;;  %v1871_v18 = vpop.permute.xlu2 %1870 }
 0x5e2   :  { %v1762_v30 = vpop.permute.xlu1 %1761  ;;  %v1760_v46 = vpop.permute.xlu0 %1759 }
 0x5e3   :  { %v1802_v28 = vsel %vm1799_vm15, %v1758_v52, %v1760_v46  ;;  %v1803_v47 = vsel %vm1799_vm15, %v1760_v46, %v1762_v30 }
 0x5e4   :  { %v1834_v32 = vadd.f32 %v1802_v28, %v1632_v58  ;;  %v1835_v36 = vadd.f32 %v1803_v47, %v1633_v62 }
 0x5e6   :  { %v1850_v12 = vmax.f32 %v1834_v32, 0.0  ;;  %v1851_v1 = vmax.f32 %v1835_v36, 0.0 }
 0x5e8   :  { %1898 = vmatpush.msra.mxu0 %v1850_v12  ;;  %1921 = vmatpush.msra.mxu1 %v1851_v1 }
 0x5ea   :  { %v1756_v34 = vpop.permute.xlu1 %1755  ;;  %v1754_v21 = vpop.permute.xlu0 %1753 }
 0x5eb   :  { %v1800_v60 = vsel %vm1799_vm15, %v1752_v29, %v1754_v21  ;;  %v1801_v41 = vsel %vm1799_vm15, %v1754_v21, %v1756_v34 }
 0x5ec   :  { %v1832_v9 = vadd.f32 %v1800_v60, %v1630_v61  ;;  %v1833_v35 = vadd.f32 %v1801_v41, %v1631_v50 }
 0x5ee   :  { %v1848_v42 = vmax.f32 %v1832_v9, 0.0  ;;  %v1849_v49 = vmax.f32 %v1833_v35, 0.0 }
 0x5f0   :  { %1899 = vmatpush.msra.mxu0 %v1848_v42  ;;  %1922 = vmatpush.msra.mxu1 %v1849_v49 }
 0x5f1   :  { %2003 = vmatmul.msk.f32.vlgmr.msra.gmra.mxu0 %vm1294_vm10, %v1864_v10  ;;  %2005 = vmatmul.msk.f32.vlgmr.msra.gmra.mxu1 %vm1294_vm10, %v1864_v10 }
 0x5f2   :  { %v1876_v25 = vpop.permute.xlu0 %1875 }
 0x5f9   :  { %2004 = vmatmul.msk.f32.gmra.mxu0 %vm1294_vm10, %v1865_v3  ;;  %2006 = vmatmul.msk.f32.gmra.mxu1 %vm1294_vm10, %v1865_v3 }
 0x64c   :  { %v1947_v23 = vpop.f32.mrf.mxu2  ;;  %v1970_v33 = vpop.f32.mrf.mxu3 }
 0x64d   :  { %v1948_v57 = vadd.f32 %v1947_v23, %v1871_v18  ;;  %v1971_v24 = vadd.f32 %v1970_v33, %v1871_v18 }
 0x64f   :  { %1981 = vst [vmem:[#allocation2 + $0x20] sm:$0xff] %v1948_v57 }
 0x650   :  { %1982 = vst [vmem:[#allocation2 + $0x28] sm:$0xff] %v1971_v24 }
 0x654   :  { %v1950_v19 = vpop.f32.mrf.mxu2  ;;  %v1973_v37 = vpop.f32.mrf.mxu3 }
 0x655   :  { %v1951_v38 = vadd.f32 %v1950_v19, %v1876_v25  ;;  %v1974_v17 = vadd.f32 %v1973_v37, %v1876_v25 }
 0x657   :  { %1983 = vst [vmem:[#allocation2 + $0x30] sm:$0xff] %v1951_v38 }
 0x658   :  { %1984 = vst [vmem:[#allocation2 + $0x38] sm:$0xff] %v1974_v17 }
 0x66e   :  { %v1901_v51 = vpop.f32.mrf.mxu0  ;;  %v1924_v48 = vpop.f32.mrf.mxu1 }
 0x66f   :  { %v1902_v15 = vadd.f32 %v1901_v51, %v1871_v18  ;;  %v1925_v43 = vadd.f32 %v1924_v48, %v1871_v18 }
 0x671   :  { %1976 = vst [vmem:[#allocation2] sm:$0xff] %v1902_v15 }
 0x672   :  { %1977 = vst [vmem:[#allocation2 + $0x8] sm:$0xff] %v1925_v43 }
 0x676   :  { %v1904_v59 = vpop.f32.mrf.mxu0  ;;  %v1927_v20 = vpop.f32.mrf.mxu1 }
 0x677   :  { %v1905_v4 = vadd.f32 %v1904_v59, %v1876_v25  ;;  %v1928_v5 = vadd.f32 %v1927_v20, %v1876_v25 }
 0x679   :  { %1978 = vst [vmem:[#allocation2 + $0x10] sm:$0xff] %v1905_v4 }
 0x67a   :  { %1979 = vst [vmem:[#allocation2 + $0x18] sm:$0xff] %v1928_v5 }
 0x67b   :  { %1997 = dma.vmem_to_hbm [thread:$0]  %s1990_s15, 1024, %s1992_s13, [#allocation3], %s2079_s16, %s2079_s16, %s2067_s28  }
 0x67c   :  { %2059 = dma.done.wait [#allocation3], 1024  }
 0x67d   :  { %2060 = vsyncadd [#allocation3], 4294966272 }
 0x67e   :  { %2002 = vsyncpa [#allocation3], 1 }

</bundles_post_ra>
